<compile_context>
chip_gen: v5e
topology: v5e:2x2
jax: 0.10.0
libtpu: 0.0.40
codegen_flags: <defaults>
</compile_context>

<pallas_src>
import functools
import numpy as np
import jax
import jax.numpy as jnp
from jax import lax
from jax.experimental import pallas as pl
from jax.experimental.pallas import tpu as pltpu

LN_MAX = 8192   # max lane columns per grid step (each column holds 8 examples)
CHUNK = 128     # lane columns per inner compute chunk (one vreg wide)
SUB = 8         # sublanes per vreg / examples per lane column


def _cdiv(a, b):
    return -(-a // b)


def _round_up(x, m):
    return _cdiv(x, m) * m


# ----------------------------- Pallas kernel --------------------------------
def quat_loss_kernel(x_ref, sg_ref, loss_ref, *, nsym, nop, chunk):
    # x_ref   : (14, 8, LN) f32   rows 0-8 gt, 9-12 pred quat, 13 sgnum (float)
    # sg_ref  : (nsym*nop*9,) f32 in SMEM; sg_ref[s*nop*9 + o*9 + 3*i + k] = sgops[s,o,i,k]
    # loss_ref: (8, LN)   f32     per-example min-over-symops loss
    ln = loss_ref.shape[1]
    n_chunks = ln // chunk

    def chunk_body(c, carry):
        off = pl.multiple_of(c * chunk, chunk)
        # full (8, chunk) rows -> no broadcasts anywhere in the math below
        g = [x_ref[r, :, pl.ds(off, chunk)] for r in range(9)]
        p = [x_ref[9 + r, :, pl.ds(off, chunk)] for r in range(4)]
        sgn = x_ref[13, :, pl.ds(off, chunk)]
        masks = [sgn == jnp.float32(s) for s in range(1, nsym)]   # hoisted, reused per op

        best = None
        for o in range(nop):
            # ---- per-example symop S = sgops[sgnum, o]: scalar-select from SMEM ----
            sym = []
            for e in range(9):
                val = sg_ref[o * 9 + e]                            # group 0 (scalar)
                for s in range(1, nsym):
                    val = jnp.where(masks[s - 1], sg_ref[s * nop * 9 + o * 9 + e], val)
                sym.append(val)

            # ---- m = S @ G (3x3 per example), pure VPU ----
            m = [sym[3 * i + 0] * g[j] + sym[3 * i + 1] * g[3 + j] + sym[3 * i + 2] * g[6 + j]
                 for i in range(3) for j in range(3)]
            m00, m01, m02, m10, m11, m12, m20, m21, m22 = m

            # ---- matrix -> quaternion (pytorch3d), branch selected BEFORE the dot ----
            t0 = 1.0 + m00 + m11 + m22
            t1 = 1.0 + m00 - m11 - m22
            t2 = 1.0 - m00 + m11 - m22
            t3 = 1.0 - m00 - m11 + m22
            tmax = jnp.maximum(jnp.maximum(t0, t1), jnp.maximum(t2, t3))
            qsq = jnp.maximum(tmax, 0.0)       # q_abs^2 at the argmax branch (no sqrt)
            e0 = t0 == tmax                    # first-max-wins == argmax tie-order
            e1 = t1 == tmax
            e2 = t2 == tmax

            a21 = m21 - m12
            a02 = m02 - m20
            a10 = m10 - m01
            s10 = m10 + m01
            s02 = m02 + m20
            s21 = m21 + m12

            qw = jnp.where(e0, qsq, jnp.where(e1, a21, jnp.where(e2, a02, a10)))
            qx = jnp.where(e0, a21, jnp.where(e1, qsq, jnp.where(e2, s10, s02)))
            qy = jnp.where(e0, a02, jnp.where(e1, s10, jnp.where(e2, qsq, s21)))
            qz = jnp.where(e0, a10, jnp.where(e1, s02, jnp.where(e2, s21, qsq)))

            # dot = num / (2*max(q_abs, 0.1));  (2*max(sqrt(qsq), 0.1))^2 == 4*max(tmax, 0.01)
            num = qw * p[0] + qx * p[1] + qy * p[2] + qz * p[3]
            loss_o = 1.0 - 0.25 * (num * num) / jnp.maximum(tmax, 0.01)
            best = loss_o if best is None else jnp.minimum(best, loss_o)

        loss_ref[:, pl.ds(off, chunk)] = best
        return carry

    lax.fori_loop(0, n_chunks, chunk_body, 0)


# ------------------------------ wrapper --------------------------------------
def quat_loss(pred_quats, gt_rotmats, sgnums, sgops, reduce=True):
    N = pred_quats.shape[0]
    Nsym, Nop = sgops.shape[0], sgops.shape[1]

    w_need = _cdiv(N, SUB)                                    # lane columns needed
    # target nb >= 2 when possible so both v7x TensorCores get work
    ln = min(LN_MAX, max(CHUNK, _round_up(_cdiv(w_need, 2), CHUNK)))
    nb = _cdiv(w_need, ln)
    W = nb * ln
    Npad = SUB * W

    # single packed operand: one pass concat + pad + reshape + transpose
    gt = gt_rotmats.reshape(N, 9).astype(jnp.float32)
    pq = pred_quats.reshape(N, 4).astype(jnp.float32)
    sg = sgnums.astype(jnp.float32).reshape(N, 1)             # exact for small ints
    x = jnp.concatenate([gt, pq, sg], axis=1)                 # (N, 14)
    x = jnp.pad(x, ((0, Npad - N), (0, 0)))                   # (Npad, 14)
    x = jnp.transpose(x.reshape(SUB, W, 14), (2, 0, 1))       # (14, 8, W)

    sg_tab = sgops.astype(jnp.float32).reshape(Nsym * Nop * 9)  # tiny SMEM table

    kernel = functools.partial(quat_loss_kernel, nsym=Nsym, nop=Nop, chunk=CHUNK)
    losses = pl.pallas_call(
        kernel,
        out_shape=jax.ShapeDtypeStruct((SUB, W), jnp.float32),
        grid=(nb,),
        in_specs=[
            pl.BlockSpec((14, SUB, ln), lambda i: (0, 0, i)),
            pl.BlockSpec(memory_space=pltpu.MemorySpace.SMEM),
        ],
        out_specs=pl.BlockSpec((SUB, ln), lambda i: (0, i)),
        compiler_params=pltpu.CompilerParams(
            dimension_semantics=("parallel",)),
    )(x, sg_tab)

    per_example = losses.reshape(-1)[:N]
    return jnp.mean(per_example) if reduce else per_example


# --------------------------- pure-JAX reference -------------------------------
def _matrix_to_quaternion_ref(matrix):
    batch_dim = matrix.shape[:-2]
    flat = matrix.reshape(batch_dim + (9,))
    m00, m01, m02, m10, m11, m12, m20, m21, m22 = [flat[..., i] for i in range(9)]

    def sqrt_pos(x):
        return jnp.where(x > 0.0, jnp.sqrt(jnp.maximum(x, 0.0)), 0.0)

    q_abs = jnp.stack([
        sqrt_pos(1.0 + m00 + m11 + m22),
        sqrt_pos(1.0 + m00 - m11 - m22),
        sqrt_pos(1.0 - m00 + m11 - m22),
        sqrt_pos(1.0 - m00 - m11 + m22)], axis=-1)
    quat_by_rijk = jnp.stack([
        jnp.stack([q_abs[..., 0] ** 2, m21 - m12, m02 - m20, m10 - m01], axis=-1),
        jnp.stack([m21 - m12, q_abs[..., 1] ** 2, m10 + m01, m02 + m20], axis=-1),
        jnp.stack([m02 - m20, m10 + m01, q_abs[..., 2] ** 2, m12 + m21], axis=-1),
        jnp.stack([m10 - m01, m20 + m02, m21 + m12, q_abs[..., 3] ** 2], axis=-1),
    ], axis=-2)
    quat_candidates = quat_by_rijk / (2.0 * jnp.maximum(q_abs[..., None], 0.1))
    idx = jnp.argmax(q_abs, axis=-1)
    return jnp.take_along_axis(
        quat_candidates, idx[..., None, None], axis=-2).squeeze(-2)


def quat_loss_ref(pred_quats, gt_rotmats, sgnums, sgops, reduce=True):
    symops = sgops[sgnums]
    gt = gt_rotmats.reshape(-1, 3, 3)
    sym_gts = jnp.einsum('noij,njk->noik', symops, gt,
                         precision=jax.lax.Precision.HIGHEST)
    sym_quats = _matrix_to_quaternion_ref(sym_gts)
    dots = jnp.sum(sym_quats * pred_quats[:, None], axis=-1)
    losses = 1.0 - jnp.abs(dots) ** 2
    l = jnp.min(losses, axis=1)
    return jnp.mean(l) if reduce else l


# ------------------------------- helpers --------------------------------------
def quat_to_mat(q):
    w, x, y, z = q[..., 0], q[..., 1], q[..., 2], q[..., 3]
    return jnp.stack([
        1 - 2 * (y * y + z * z), 2 * (x * y - z * w), 2 * (x * z + y * w),
        2 * (x * y + z * w), 1 - 2 * (x * x + z * z), 2 * (y * z - x * w),
        2 * (x * z - y * w), 2 * (y * z + x * w), 1 - 2 * (x * x + y * y),
    ], axis=-1).reshape(q.shape[:-1] + (3, 3))


def build_sgops():
    # deterministic synthetic space-group operator table (mirrors __init__)
    sgop_table = {
        "P1": [np.eye(3)],
        "P2": [np.eye(3), np.diag([-1.0, -1.0, 1.0])],
        "P222": [np.eye(3), np.diag([1.0, -1.0, -1.0]),
                 np.diag([-1.0, 1.0, -1.0]), np.diag([-1.0, -1.0, 1.0])],
    }
    pdb_id_to_num = {"P1": 0, "P2": 1, "P222": 2}
    Nop = max(len(v) for v in sgop_table.values())
    Nsym = len(sgop_table)
    sgops = np.zeros((Nsym, Nop, 3, 3), np.float32)
    sgops[:, :] = np.eye(3)
    for pdb_id, rots in sgop_table.items():
        sgops[pdb_id_to_num[pdb_id], :len(rots)] = np.asarray(rots)
    return jnp.asarray(sgops), Nsym


# --------------------------------- main ---------------------------------------
if __name__ == "__main__":
    sgops, Nsym = build_sgops()

    N = 37
    key = jax.random.PRNGKey(0)
    k1, k2, k3 = jax.random.split(key, 3)

    pred_quats = jax.random.normal(k1, (N, 4), jnp.float32)
    pred_quats = pred_quats / jnp.linalg.norm(pred_quats, axis=-1, keepdims=True)

    gt_q = jax.random.normal(k2, (N, 4), jnp.float32)
    gt_q = gt_q / jnp.linalg.norm(gt_q, axis=-1, keepdims=True)
    gt_rotmats = quat_to_mat(gt_q).reshape(N, 9)

    sgnums = jax.random.randint(k3, (N,), 0, Nsym)

    out_mean = quat_loss(pred_quats, gt_rotmats, sgnums, sgops, reduce=True)
    out_per = quat_loss(pred_quats, gt_rotmats, sgnums, sgops, reduce=False)
    jax.block_until_ready((out_mean, out_per))

    ref_mean = quat_loss_ref(pred_quats, gt_rotmats, sgnums, sgops, reduce=True)
    ref_per = quat_loss_ref(pred_quats, gt_rotmats, sgnums, sgops, reduce=False)

    assert jnp.allclose(out_per, ref_per, atol=1e-4), (out_per, ref_per)
    assert jnp.allclose(out_mean, ref_mean, atol=1e-4), (out_mean, ref_mean)

    print("KERNEL_OK")
</pallas_src>

<mosaic_0001>
module attributes {stable_mosaic.version = 11 : i64} {
  func.func @quat_loss_kernel(%arg0: i32, %arg1: memref<14x8x128xf32, #tpu.memory_space<vmem>>, %arg2: memref<108xf32, #tpu.memory_space<smem>>, %arg3: memref<8x128xf32, #tpu.memory_space<vmem>>) attributes {dimension_semantics = [#tpu.dimension_semantics<parallel>], iteration_bounds = array<i64: 1>, scalar_prefetch = 0 : i64, scratch_operands = 0 : i64, tpu.core_type = #tpu.core_type<tc>, window_params = [{transform_indices = @transform_0, window_bounds = array<i64: 14, 8, 128>}, {transform_indices = @transform_1, window_bounds = array<i64: 108>}, {transform_indices = @transform_2, window_bounds = array<i64: 8, 128>}]} {
    %c0_i32 = arith.constant 0 : i32
    %c128_i32 = arith.constant 128 : i32
    %0 = arith.muli %c0_i32, %c128_i32 : i32
    %1 = tpu.assume_multiple %0, 128 : i32
    %c0 = arith.constant 0 : index
    %c0_0 = arith.constant 0 : index
    %2 = arith.index_cast %1 : i32 to index
    %3 = vector.load %arg1[%c0, %c0_0, %2] : memref<14x8x128xf32, #tpu.memory_space<vmem>>, vector<1x8x128xf32>
    %4 = vector.shape_cast %3 : vector<1x8x128xf32> to vector<8x128xf32>
    %c1 = arith.constant 1 : index
    %c0_1 = arith.constant 0 : index
    %5 = arith.index_cast %1 : i32 to index
    %6 = vector.load %arg1[%c1, %c0_1, %5] : memref<14x8x128xf32, #tpu.memory_space<vmem>>, vector<1x8x128xf32>
    %7 = vector.shape_cast %6 : vector<1x8x128xf32> to vector<8x128xf32>
    %c2 = arith.constant 2 : index
    %c0_2 = arith.constant 0 : index
    %8 = arith.index_cast %1 : i32 to index
    %9 = vector.load %arg1[%c2, %c0_2, %8] : memref<14x8x128xf32, #tpu.memory_space<vmem>>, vector<1x8x128xf32>
    %10 = vector.shape_cast %9 : vector<1x8x128xf32> to vector<8x128xf32>
    %c3 = arith.constant 3 : index
    %c0_3 = arith.constant 0 : index
    %11 = arith.index_cast %1 : i32 to index
    %12 = vector.load %arg1[%c3, %c0_3, %11] : memref<14x8x128xf32, #tpu.memory_space<vmem>>, vector<1x8x128xf32>
    %13 = vector.shape_cast %12 : vector<1x8x128xf32> to vector<8x128xf32>
    %c4 = arith.constant 4 : index
    %c0_4 = arith.constant 0 : index
    %14 = arith.index_cast %1 : i32 to index
    %15 = vector.load %arg1[%c4, %c0_4, %14] : memref<14x8x128xf32, #tpu.memory_space<vmem>>, vector<1x8x128xf32>
    %16 = vector.shape_cast %15 : vector<1x8x128xf32> to vector<8x128xf32>
    %c5 = arith.constant 5 : index
    %c0_5 = arith.constant 0 : index
    %17 = arith.index_cast %1 : i32 to index
    %18 = vector.load %arg1[%c5, %c0_5, %17] : memref<14x8x128xf32, #tpu.memory_space<vmem>>, vector<1x8x128xf32>
    %19 = vector.shape_cast %18 : vector<1x8x128xf32> to vector<8x128xf32>
    %c6 = arith.constant 6 : index
    %c0_6 = arith.constant 0 : index
    %20 = arith.index_cast %1 : i32 to index
    %21 = vector.load %arg1[%c6, %c0_6, %20] : memref<14x8x128xf32, #tpu.memory_space<vmem>>, vector<1x8x128xf32>
    %22 = vector.shape_cast %21 : vector<1x8x128xf32> to vector<8x128xf32>
    %c7 = arith.constant 7 : index
    %c0_7 = arith.constant 0 : index
    %23 = arith.index_cast %1 : i32 to index
    %24 = vector.load %arg1[%c7, %c0_7, %23] : memref<14x8x128xf32, #tpu.memory_space<vmem>>, vector<1x8x128xf32>
    %25 = vector.shape_cast %24 : vector<1x8x128xf32> to vector<8x128xf32>
    %c8 = arith.constant 8 : index
    %c0_8 = arith.constant 0 : index
    %26 = arith.index_cast %1 : i32 to index
    %27 = vector.load %arg1[%c8, %c0_8, %26] : memref<14x8x128xf32, #tpu.memory_space<vmem>>, vector<1x8x128xf32>
    %28 = vector.shape_cast %27 : vector<1x8x128xf32> to vector<8x128xf32>
    %c9 = arith.constant 9 : index
    %c0_9 = arith.constant 0 : index
    %29 = arith.index_cast %1 : i32 to index
    %30 = vector.load %arg1[%c9, %c0_9, %29] : memref<14x8x128xf32, #tpu.memory_space<vmem>>, vector<1x8x128xf32>
    %31 = vector.shape_cast %30 : vector<1x8x128xf32> to vector<8x128xf32>
    %c10 = arith.constant 10 : index
    %c0_10 = arith.constant 0 : index
    %32 = arith.index_cast %1 : i32 to index
    %33 = vector.load %arg1[%c10, %c0_10, %32] : memref<14x8x128xf32, #tpu.memory_space<vmem>>, vector<1x8x128xf32>
    %34 = vector.shape_cast %33 : vector<1x8x128xf32> to vector<8x128xf32>
    %c11 = arith.constant 11 : index
    %c0_11 = arith.constant 0 : index
    %35 = arith.index_cast %1 : i32 to index
    %36 = vector.load %arg1[%c11, %c0_11, %35] : memref<14x8x128xf32, #tpu.memory_space<vmem>>, vector<1x8x128xf32>
    %37 = vector.shape_cast %36 : vector<1x8x128xf32> to vector<8x128xf32>
    %c12 = arith.constant 12 : index
    %c0_12 = arith.constant 0 : index
    %38 = arith.index_cast %1 : i32 to index
    %39 = vector.load %arg1[%c12, %c0_12, %38] : memref<14x8x128xf32, #tpu.memory_space<vmem>>, vector<1x8x128xf32>
    %40 = vector.shape_cast %39 : vector<1x8x128xf32> to vector<8x128xf32>
    %c13 = arith.constant 13 : index
    %c0_13 = arith.constant 0 : index
    %41 = arith.index_cast %1 : i32 to index
    %42 = vector.load %arg1[%c13, %c0_13, %41] : memref<14x8x128xf32, #tpu.memory_space<vmem>>, vector<1x8x128xf32>
    %43 = vector.shape_cast %42 : vector<1x8x128xf32> to vector<8x128xf32>
    %cst = arith.constant 1.000000e+00 : f32
    %44 = vector.broadcast %cst : f32 to vector<8x128xf32>
    %45 = arith.cmpf oeq, %43, %44 : vector<8x128xf32>
    %cst_14 = arith.constant 2.000000e+00 : f32
    %46 = vector.broadcast %cst_14 : f32 to vector<8x128xf32>
    %47 = arith.cmpf oeq, %43, %46 : vector<8x128xf32>
    %c0_15 = arith.constant 0 : index
    %48 = memref.load %arg2[%c0_15] : memref<108xf32, #tpu.memory_space<smem>>
    %c36 = arith.constant 36 : index
    %49 = memref.load %arg2[%c36] : memref<108xf32, #tpu.memory_space<smem>>
    %50 = vector.broadcast %49 : f32 to vector<8x128xf32>
    %51 = vector.broadcast %48 : f32 to vector<8x128xf32>
    %52 = arith.select %45, %50, %51 : vector<8x128xi1>, vector<8x128xf32>
    %c72 = arith.constant 72 : index
    %53 = memref.load %arg2[%c72] : memref<108xf32, #tpu.memory_space<smem>>
    %54 = vector.broadcast %53 : f32 to vector<8x128xf32>
    %55 = arith.select %47, %54, %52 : vector<8x128xi1>, vector<8x128xf32>
    %c1_16 = arith.constant 1 : index
    %56 = memref.load %arg2[%c1_16] : memref<108xf32, #tpu.memory_space<smem>>
    %c37 = arith.constant 37 : index
    %57 = memref.load %arg2[%c37] : memref<108xf32, #tpu.memory_space<smem>>
    %58 = vector.broadcast %57 : f32 to vector<8x128xf32>
    %59 = vector.broadcast %56 : f32 to vector<8x128xf32>
    %60 = arith.select %45, %58, %59 : vector<8x128xi1>, vector<8x128xf32>
    %c73 = arith.constant 73 : index
    %61 = memref.load %arg2[%c73] : memref<108xf32, #tpu.memory_space<smem>>
    %62 = vector.broadcast %61 : f32 to vector<8x128xf32>
    %63 = arith.select %47, %62, %60 : vector<8x128xi1>, vector<8x128xf32>
    %c2_17 = arith.constant 2 : index
    %64 = memref.load %arg2[%c2_17] : memref<108xf32, #tpu.memory_space<smem>>
    %c38 = arith.constant 38 : index
    %65 = memref.load %arg2[%c38] : memref<108xf32, #tpu.memory_space<smem>>
    %66 = vector.broadcast %65 : f32 to vector<8x128xf32>
    %67 = vector.broadcast %64 : f32 to vector<8x128xf32>
    %68 = arith.select %45, %66, %67 : vector<8x128xi1>, vector<8x128xf32>
    %c74 = arith.constant 74 : index
    %69 = memref.load %arg2[%c74] : memref<108xf32, #tpu.memory_space<smem>>
    %70 = vector.broadcast %69 : f32 to vector<8x128xf32>
    %71 = arith.select %47, %70, %68 : vector<8x128xi1>, vector<8x128xf32>
    %c3_18 = arith.constant 3 : index
    %72 = memref.load %arg2[%c3_18] : memref<108xf32, #tpu.memory_space<smem>>
    %c39 = arith.constant 39 : index
    %73 = memref.load %arg2[%c39] : memref<108xf32, #tpu.memory_space<smem>>
    %74 = vector.broadcast %73 : f32 to vector<8x128xf32>
    %75 = vector.broadcast %72 : f32 to vector<8x128xf32>
    %76 = arith.select %45, %74, %75 : vector<8x128xi1>, vector<8x128xf32>
    %c75 = arith.constant 75 : index
    %77 = memref.load %arg2[%c75] : memref<108xf32, #tpu.memory_space<smem>>
    %78 = vector.broadcast %77 : f32 to vector<8x128xf32>
    %79 = arith.select %47, %78, %76 : vector<8x128xi1>, vector<8x128xf32>
    %c4_19 = arith.constant 4 : index
    %80 = memref.load %arg2[%c4_19] : memref<108xf32, #tpu.memory_space<smem>>
    %c40 = arith.constant 40 : index
    %81 = memref.load %arg2[%c40] : memref<108xf32, #tpu.memory_space<smem>>
    %82 = vector.broadcast %81 : f32 to vector<8x128xf32>
    %83 = vector.broadcast %80 : f32 to vector<8x128xf32>
    %84 = arith.select %45, %82, %83 : vector<8x128xi1>, vector<8x128xf32>
    %c76 = arith.constant 76 : index
    %85 = memref.load %arg2[%c76] : memref<108xf32, #tpu.memory_space<smem>>
    %86 = vector.broadcast %85 : f32 to vector<8x128xf32>
    %87 = arith.select %47, %86, %84 : vector<8x128xi1>, vector<8x128xf32>
    %c5_20 = arith.constant 5 : index
    %88 = memref.load %arg2[%c5_20] : memref<108xf32, #tpu.memory_space<smem>>
    %c41 = arith.constant 41 : index
    %89 = memref.load %arg2[%c41] : memref<108xf32, #tpu.memory_space<smem>>
    %90 = vector.broadcast %89 : f32 to vector<8x128xf32>
    %91 = vector.broadcast %88 : f32 to vector<8x128xf32>
    %92 = arith.select %45, %90, %91 : vector<8x128xi1>, vector<8x128xf32>
    %c77 = arith.constant 77 : index
    %93 = memref.load %arg2[%c77] : memref<108xf32, #tpu.memory_space<smem>>
    %94 = vector.broadcast %93 : f32 to vector<8x128xf32>
    %95 = arith.select %47, %94, %92 : vector<8x128xi1>, vector<8x128xf32>
    %c6_21 = arith.constant 6 : index
    %96 = memref.load %arg2[%c6_21] : memref<108xf32, #tpu.memory_space<smem>>
    %c42 = arith.constant 42 : index
    %97 = memref.load %arg2[%c42] : memref<108xf32, #tpu.memory_space<smem>>
    %98 = vector.broadcast %97 : f32 to vector<8x128xf32>
    %99 = vector.broadcast %96 : f32 to vector<8x128xf32>
    %100 = arith.select %45, %98, %99 : vector<8x128xi1>, vector<8x128xf32>
    %c78 = arith.constant 78 : index
    %101 = memref.load %arg2[%c78] : memref<108xf32, #tpu.memory_space<smem>>
    %102 = vector.broadcast %101 : f32 to vector<8x128xf32>
    %103 = arith.select %47, %102, %100 : vector<8x128xi1>, vector<8x128xf32>
    %c7_22 = arith.constant 7 : index
    %104 = memref.load %arg2[%c7_22] : memref<108xf32, #tpu.memory_space<smem>>
    %c43 = arith.constant 43 : index
    %105 = memref.load %arg2[%c43] : memref<108xf32, #tpu.memory_space<smem>>
    %106 = vector.broadcast %105 : f32 to vector<8x128xf32>
    %107 = vector.broadcast %104 : f32 to vector<8x128xf32>
    %108 = arith.select %45, %106, %107 : vector<8x128xi1>, vector<8x128xf32>
    %c79 = arith.constant 79 : index
    %109 = memref.load %arg2[%c79] : memref<108xf32, #tpu.memory_space<smem>>
    %110 = vector.broadcast %109 : f32 to vector<8x128xf32>
    %111 = arith.select %47, %110, %108 : vector<8x128xi1>, vector<8x128xf32>
    %c8_23 = arith.constant 8 : index
    %112 = memref.load %arg2[%c8_23] : memref<108xf32, #tpu.memory_space<smem>>
    %c44 = arith.constant 44 : index
    %113 = memref.load %arg2[%c44] : memref<108xf32, #tpu.memory_space<smem>>
    %114 = vector.broadcast %113 : f32 to vector<8x128xf32>
    %115 = vector.broadcast %112 : f32 to vector<8x128xf32>
    %116 = arith.select %45, %114, %115 : vector<8x128xi1>, vector<8x128xf32>
    %c80 = arith.constant 80 : index
    %117 = memref.load %arg2[%c80] : memref<108xf32, #tpu.memory_space<smem>>
    %118 = vector.broadcast %117 : f32 to vector<8x128xf32>
    %119 = arith.select %47, %118, %116 : vector<8x128xi1>, vector<8x128xf32>
    %120 = arith.mulf %55, %4 : vector<8x128xf32>
    %121 = arith.mulf %63, %13 : vector<8x128xf32>
    %122 = arith.addf %120, %121 : vector<8x128xf32>
    %123 = arith.mulf %71, %22 : vector<8x128xf32>
    %124 = arith.addf %122, %123 : vector<8x128xf32>
    %125 = arith.mulf %55, %7 : vector<8x128xf32>
    %126 = arith.mulf %63, %16 : vector<8x128xf32>
    %127 = arith.addf %125, %126 : vector<8x128xf32>
    %128 = arith.mulf %71, %25 : vector<8x128xf32>
    %129 = arith.addf %127, %128 : vector<8x128xf32>
    %130 = arith.mulf %55, %10 : vector<8x128xf32>
    %131 = arith.mulf %63, %19 : vector<8x128xf32>
    %132 = arith.addf %130, %131 : vector<8x128xf32>
    %133 = arith.mulf %71, %28 : vector<8x128xf32>
    %134 = arith.addf %132, %133 : vector<8x128xf32>
    %135 = arith.mulf %79, %4 : vector<8x128xf32>
    %136 = arith.mulf %87, %13 : vector<8x128xf32>
    %137 = arith.addf %135, %136 : vector<8x128xf32>
    %138 = arith.mulf %95, %22 : vector<8x128xf32>
    %139 = arith.addf %137, %138 : vector<8x128xf32>
    %140 = arith.mulf %79, %7 : vector<8x128xf32>
    %141 = arith.mulf %87, %16 : vector<8x128xf32>
    %142 = arith.addf %140, %141 : vector<8x128xf32>
    %143 = arith.mulf %95, %25 : vector<8x128xf32>
    %144 = arith.addf %142, %143 : vector<8x128xf32>
    %145 = arith.mulf %79, %10 : vector<8x128xf32>
    %146 = arith.mulf %87, %19 : vector<8x128xf32>
    %147 = arith.addf %145, %146 : vector<8x128xf32>
    %148 = arith.mulf %95, %28 : vector<8x128xf32>
    %149 = arith.addf %147, %148 : vector<8x128xf32>
    %150 = arith.mulf %103, %4 : vector<8x128xf32>
    %151 = arith.mulf %111, %13 : vector<8x128xf32>
    %152 = arith.addf %150, %151 : vector<8x128xf32>
    %153 = arith.mulf %119, %22 : vector<8x128xf32>
    %154 = arith.addf %152, %153 : vector<8x128xf32>
    %155 = arith.mulf %103, %7 : vector<8x128xf32>
    %156 = arith.mulf %111, %16 : vector<8x128xf32>
    %157 = arith.addf %155, %156 : vector<8x128xf32>
    %158 = arith.mulf %119, %25 : vector<8x128xf32>
    %159 = arith.addf %157, %158 : vector<8x128xf32>
    %160 = arith.mulf %103, %10 : vector<8x128xf32>
    %161 = arith.mulf %111, %19 : vector<8x128xf32>
    %162 = arith.addf %160, %161 : vector<8x128xf32>
    %163 = arith.mulf %119, %28 : vector<8x128xf32>
    %164 = arith.addf %162, %163 : vector<8x128xf32>
    %cst_24 = arith.constant 1.000000e+00 : f32
    %165 = vector.broadcast %cst_24 : f32 to vector<8x128xf32>
    %166 = arith.addf %165, %124 : vector<8x128xf32>
    %167 = arith.addf %166, %144 : vector<8x128xf32>
    %168 = arith.addf %167, %164 : vector<8x128xf32>
    %cst_25 = arith.constant 1.000000e+00 : f32
    %169 = vector.broadcast %cst_25 : f32 to vector<8x128xf32>
    %170 = arith.addf %169, %124 : vector<8x128xf32>
    %171 = arith.subf %170, %144 : vector<8x128xf32>
    %172 = arith.subf %171, %164 : vector<8x128xf32>
    %cst_26 = arith.constant 1.000000e+00 : f32
    %173 = vector.broadcast %cst_26 : f32 to vector<8x128xf32>
    %174 = arith.subf %173, %124 : vector<8x128xf32>
    %175 = arith.addf %174, %144 : vector<8x128xf32>
    %176 = arith.subf %175, %164 : vector<8x128xf32>
    %cst_27 = arith.constant 1.000000e+00 : f32
    %177 = vector.broadcast %cst_27 : f32 to vector<8x128xf32>
    %178 = arith.subf %177, %124 : vector<8x128xf32>
    %179 = arith.subf %178, %144 : vector<8x128xf32>
    %180 = arith.addf %179, %164 : vector<8x128xf32>
    %181 = arith.maximumf %168, %172 : vector<8x128xf32>
    %182 = arith.maximumf %176, %180 : vector<8x128xf32>
    %183 = arith.maximumf %181, %182 : vector<8x128xf32>
    %cst_28 = arith.constant 0.000000e+00 : f32
    %184 = vector.broadcast %cst_28 : f32 to vector<8x128xf32>
    %185 = arith.maximumf %183, %184 : vector<8x128xf32>
    %186 = arith.cmpf oeq, %168, %183 : vector<8x128xf32>
    %187 = arith.cmpf oeq, %172, %183 : vector<8x128xf32>
    %188 = arith.cmpf oeq, %176, %183 : vector<8x128xf32>
    %189 = arith.subf %159, %149 : vector<8x128xf32>
    %190 = arith.subf %134, %154 : vector<8x128xf32>
    %191 = arith.subf %139, %129 : vector<8x128xf32>
    %192 = arith.addf %139, %129 : vector<8x128xf32>
    %193 = arith.addf %134, %154 : vector<8x128xf32>
    %194 = arith.addf %159, %149 : vector<8x128xf32>
    %195 = arith.select %188, %190, %191 : vector<8x128xi1>, vector<8x128xf32>
    %196 = arith.select %187, %189, %195 : vector<8x128xi1>, vector<8x128xf32>
    %197 = arith.select %186, %185, %196 : vector<8x128xi1>, vector<8x128xf32>
    %198 = arith.select %188, %192, %193 : vector<8x128xi1>, vector<8x128xf32>
    %199 = arith.select %187, %185, %198 : vector<8x128xi1>, vector<8x128xf32>
    %200 = arith.select %186, %189, %199 : vector<8x128xi1>, vector<8x128xf32>
    %201 = arith.select %188, %185, %194 : vector<8x128xi1>, vector<8x128xf32>
    %202 = arith.select %187, %192, %201 : vector<8x128xi1>, vector<8x128xf32>
    %203 = arith.select %186, %190, %202 : vector<8x128xi1>, vector<8x128xf32>
    %204 = arith.select %188, %194, %185 : vector<8x128xi1>, vector<8x128xf32>
    %205 = arith.select %187, %193, %204 : vector<8x128xi1>, vector<8x128xf32>
    %206 = arith.select %186, %191, %205 : vector<8x128xi1>, vector<8x128xf32>
    %207 = arith.mulf %197, %31 : vector<8x128xf32>
    %208 = arith.mulf %200, %34 : vector<8x128xf32>
    %209 = arith.addf %207, %208 : vector<8x128xf32>
    %210 = arith.mulf %203, %37 : vector<8x128xf32>
    %211 = arith.addf %209, %210 : vector<8x128xf32>
    %212 = arith.mulf %206, %40 : vector<8x128xf32>
    %213 = arith.addf %211, %212 : vector<8x128xf32>
    %214 = arith.mulf %213, %213 : vector<8x128xf32>
    %cst_29 = arith.constant 2.500000e-01 : f32
    %215 = vector.broadcast %cst_29 : f32 to vector<8x128xf32>
    %216 = arith.mulf %215, %214 : vector<8x128xf32>
    %cst_30 = arith.constant 0.00999999977 : f32
    %217 = vector.broadcast %cst_30 : f32 to vector<8x128xf32>
    %218 = arith.maximumf %183, %217 : vector<8x128xf32>
    %219 = arith.divf %216, %218 : vector<8x128xf32>
    %cst_31 = arith.constant 1.000000e+00 : f32
    %220 = vector.broadcast %cst_31 : f32 to vector<8x128xf32>
    %221 = arith.subf %220, %219 : vector<8x128xf32>
    %c9_32 = arith.constant 9 : index
    %222 = memref.load %arg2[%c9_32] : memref<108xf32, #tpu.memory_space<smem>>
    %c45 = arith.constant 45 : index
    %223 = memref.load %arg2[%c45] : memref<108xf32, #tpu.memory_space<smem>>
    %224 = vector.broadcast %223 : f32 to vector<8x128xf32>
    %225 = vector.broadcast %222 : f32 to vector<8x128xf32>
    %226 = arith.select %45, %224, %225 : vector<8x128xi1>, vector<8x128xf32>
    %c81 = arith.constant 81 : index
    %227 = memref.load %arg2[%c81] : memref<108xf32, #tpu.memory_space<smem>>
    %228 = vector.broadcast %227 : f32 to vector<8x128xf32>
    %229 = arith.select %47, %228, %226 : vector<8x128xi1>, vector<8x128xf32>
    %c10_33 = arith.constant 10 : index
    %230 = memref.load %arg2[%c10_33] : memref<108xf32, #tpu.memory_space<smem>>
    %c46 = arith.constant 46 : index
    %231 = memref.load %arg2[%c46] : memref<108xf32, #tpu.memory_space<smem>>
    %232 = vector.broadcast %231 : f32 to vector<8x128xf32>
    %233 = vector.broadcast %230 : f32 to vector<8x128xf32>
    %234 = arith.select %45, %232, %233 : vector<8x128xi1>, vector<8x128xf32>
    %c82 = arith.constant 82 : index
    %235 = memref.load %arg2[%c82] : memref<108xf32, #tpu.memory_space<smem>>
    %236 = vector.broadcast %235 : f32 to vector<8x128xf32>
    %237 = arith.select %47, %236, %234 : vector<8x128xi1>, vector<8x128xf32>
    %c11_34 = arith.constant 11 : index
    %238 = memref.load %arg2[%c11_34] : memref<108xf32, #tpu.memory_space<smem>>
    %c47 = arith.constant 47 : index
    %239 = memref.load %arg2[%c47] : memref<108xf32, #tpu.memory_space<smem>>
    %240 = vector.broadcast %239 : f32 to vector<8x128xf32>
    %241 = vector.broadcast %238 : f32 to vector<8x128xf32>
    %242 = arith.select %45, %240, %241 : vector<8x128xi1>, vector<8x128xf32>
    %c83 = arith.constant 83 : index
    %243 = memref.load %arg2[%c83] : memref<108xf32, #tpu.memory_space<smem>>
    %244 = vector.broadcast %243 : f32 to vector<8x128xf32>
    %245 = arith.select %47, %244, %242 : vector<8x128xi1>, vector<8x128xf32>
    %c12_35 = arith.constant 12 : index
    %246 = memref.load %arg2[%c12_35] : memref<108xf32, #tpu.memory_space<smem>>
    %c48 = arith.constant 48 : index
    %247 = memref.load %arg2[%c48] : memref<108xf32, #tpu.memory_space<smem>>
    %248 = vector.broadcast %247 : f32 to vector<8x128xf32>
    %249 = vector.broadcast %246 : f32 to vector<8x128xf32>
    %250 = arith.select %45, %248, %249 : vector<8x128xi1>, vector<8x128xf32>
    %c84 = arith.constant 84 : index
    %251 = memref.load %arg2[%c84] : memref<108xf32, #tpu.memory_space<smem>>
    %252 = vector.broadcast %251 : f32 to vector<8x128xf32>
    %253 = arith.select %47, %252, %250 : vector<8x128xi1>, vector<8x128xf32>
    %c13_36 = arith.constant 13 : index
    %254 = memref.load %arg2[%c13_36] : memref<108xf32, #tpu.memory_space<smem>>
    %c49 = arith.constant 49 : index
    %255 = memref.load %arg2[%c49] : memref<108xf32, #tpu.memory_space<smem>>
    %256 = vector.broadcast %255 : f32 to vector<8x128xf32>
    %257 = vector.broadcast %254 : f32 to vector<8x128xf32>
    %258 = arith.select %45, %256, %257 : vector<8x128xi1>, vector<8x128xf32>
    %c85 = arith.constant 85 : index
    %259 = memref.load %arg2[%c85] : memref<108xf32, #tpu.memory_space<smem>>
    %260 = vector.broadcast %259 : f32 to vector<8x128xf32>
    %261 = arith.select %47, %260, %258 : vector<8x128xi1>, vector<8x128xf32>
    %c14 = arith.constant 14 : index
    %262 = memref.load %arg2[%c14] : memref<108xf32, #tpu.memory_space<smem>>
    %c50 = arith.constant 50 : index
    %263 = memref.load %arg2[%c50] : memref<108xf32, #tpu.memory_space<smem>>
    %264 = vector.broadcast %263 : f32 to vector<8x128xf32>
    %265 = vector.broadcast %262 : f32 to vector<8x128xf32>
    %266 = arith.select %45, %264, %265 : vector<8x128xi1>, vector<8x128xf32>
    %c86 = arith.constant 86 : index
    %267 = memref.load %arg2[%c86] : memref<108xf32, #tpu.memory_space<smem>>
    %268 = vector.broadcast %267 : f32 to vector<8x128xf32>
    %269 = arith.select %47, %268, %266 : vector<8x128xi1>, vector<8x128xf32>
    %c15 = arith.constant 15 : index
    %270 = memref.load %arg2[%c15] : memref<108xf32, #tpu.memory_space<smem>>
    %c51 = arith.constant 51 : index
    %271 = memref.load %arg2[%c51] : memref<108xf32, #tpu.memory_space<smem>>
    %272 = vector.broadcast %271 : f32 to vector<8x128xf32>
    %273 = vector.broadcast %270 : f32 to vector<8x128xf32>
    %274 = arith.select %45, %272, %273 : vector<8x128xi1>, vector<8x128xf32>
    %c87 = arith.constant 87 : index
    %275 = memref.load %arg2[%c87] : memref<108xf32, #tpu.memory_space<smem>>
    %276 = vector.broadcast %275 : f32 to vector<8x128xf32>
    %277 = arith.select %47, %276, %274 : vector<8x128xi1>, vector<8x128xf32>
    %c16 = arith.constant 16 : index
    %278 = memref.load %arg2[%c16] : memref<108xf32, #tpu.memory_space<smem>>
    %c52 = arith.constant 52 : index
    %279 = memref.load %arg2[%c52] : memref<108xf32, #tpu.memory_space<smem>>
    %280 = vector.broadcast %279 : f32 to vector<8x128xf32>
    %281 = vector.broadcast %278 : f32 to vector<8x128xf32>
    %282 = arith.select %45, %280, %281 : vector<8x128xi1>, vector<8x128xf32>
    %c88 = arith.constant 88 : index
    %283 = memref.load %arg2[%c88] : memref<108xf32, #tpu.memory_space<smem>>
    %284 = vector.broadcast %283 : f32 to vector<8x128xf32>
    %285 = arith.select %47, %284, %282 : vector<8x128xi1>, vector<8x128xf32>
    %c17 = arith.constant 17 : index
    %286 = memref.load %arg2[%c17] : memref<108xf32, #tpu.memory_space<smem>>
    %c53 = arith.constant 53 : index
    %287 = memref.load %arg2[%c53] : memref<108xf32, #tpu.memory_space<smem>>
    %288 = vector.broadcast %287 : f32 to vector<8x128xf32>
    %289 = vector.broadcast %286 : f32 to vector<8x128xf32>
    %290 = arith.select %45, %288, %289 : vector<8x128xi1>, vector<8x128xf32>
    %c89 = arith.constant 89 : index
    %291 = memref.load %arg2[%c89] : memref<108xf32, #tpu.memory_space<smem>>
    %292 = vector.broadcast %291 : f32 to vector<8x128xf32>
    %293 = arith.select %47, %292, %290 : vector<8x128xi1>, vector<8x128xf32>
    %294 = arith.mulf %229, %4 : vector<8x128xf32>
    %295 = arith.mulf %237, %13 : vector<8x128xf32>
    %296 = arith.addf %294, %295 : vector<8x128xf32>
    %297 = arith.mulf %245, %22 : vector<8x128xf32>
    %298 = arith.addf %296, %297 : vector<8x128xf32>
    %299 = arith.mulf %229, %7 : vector<8x128xf32>
    %300 = arith.mulf %237, %16 : vector<8x128xf32>
    %301 = arith.addf %299, %300 : vector<8x128xf32>
    %302 = arith.mulf %245, %25 : vector<8x128xf32>
    %303 = arith.addf %301, %302 : vector<8x128xf32>
    %304 = arith.mulf %229, %10 : vector<8x128xf32>
    %305 = arith.mulf %237, %19 : vector<8x128xf32>
    %306 = arith.addf %304, %305 : vector<8x128xf32>
    %307 = arith.mulf %245, %28 : vector<8x128xf32>
    %308 = arith.addf %306, %307 : vector<8x128xf32>
    %309 = arith.mulf %253, %4 : vector<8x128xf32>
    %310 = arith.mulf %261, %13 : vector<8x128xf32>
    %311 = arith.addf %309, %310 : vector<8x128xf32>
    %312 = arith.mulf %269, %22 : vector<8x128xf32>
    %313 = arith.addf %311, %312 : vector<8x128xf32>
    %314 = arith.mulf %253, %7 : vector<8x128xf32>
    %315 = arith.mulf %261, %16 : vector<8x128xf32>
    %316 = arith.addf %314, %315 : vector<8x128xf32>
    %317 = arith.mulf %269, %25 : vector<8x128xf32>
    %318 = arith.addf %316, %317 : vector<8x128xf32>
    %319 = arith.mulf %253, %10 : vector<8x128xf32>
    %320 = arith.mulf %261, %19 : vector<8x128xf32>
    %321 = arith.addf %319, %320 : vector<8x128xf32>
    %322 = arith.mulf %269, %28 : vector<8x128xf32>
    %323 = arith.addf %321, %322 : vector<8x128xf32>
    %324 = arith.mulf %277, %4 : vector<8x128xf32>
    %325 = arith.mulf %285, %13 : vector<8x128xf32>
    %326 = arith.addf %324, %325 : vector<8x128xf32>
    %327 = arith.mulf %293, %22 : vector<8x128xf32>
    %328 = arith.addf %326, %327 : vector<8x128xf32>
    %329 = arith.mulf %277, %7 : vector<8x128xf32>
    %330 = arith.mulf %285, %16 : vector<8x128xf32>
    %331 = arith.addf %329, %330 : vector<8x128xf32>
    %332 = arith.mulf %293, %25 : vector<8x128xf32>
    %333 = arith.addf %331, %332 : vector<8x128xf32>
    %334 = arith.mulf %277, %10 : vector<8x128xf32>
    %335 = arith.mulf %285, %19 : vector<8x128xf32>
    %336 = arith.addf %334, %335 : vector<8x128xf32>
    %337 = arith.mulf %293, %28 : vector<8x128xf32>
    %338 = arith.addf %336, %337 : vector<8x128xf32>
    %cst_37 = arith.constant 1.000000e+00 : f32
    %339 = vector.broadcast %cst_37 : f32 to vector<8x128xf32>
    %340 = arith.addf %339, %298 : vector<8x128xf32>
    %341 = arith.addf %340, %318 : vector<8x128xf32>
    %342 = arith.addf %341, %338 : vector<8x128xf32>
    %cst_38 = arith.constant 1.000000e+00 : f32
    %343 = vector.broadcast %cst_38 : f32 to vector<8x128xf32>
    %344 = arith.addf %343, %298 : vector<8x128xf32>
    %345 = arith.subf %344, %318 : vector<8x128xf32>
    %346 = arith.subf %345, %338 : vector<8x128xf32>
    %cst_39 = arith.constant 1.000000e+00 : f32
    %347 = vector.broadcast %cst_39 : f32 to vector<8x128xf32>
    %348 = arith.subf %347, %298 : vector<8x128xf32>
    %349 = arith.addf %348, %318 : vector<8x128xf32>
    %350 = arith.subf %349, %338 : vector<8x128xf32>
    %cst_40 = arith.constant 1.000000e+00 : f32
    %351 = vector.broadcast %cst_40 : f32 to vector<8x128xf32>
    %352 = arith.subf %351, %298 : vector<8x128xf32>
    %353 = arith.subf %352, %318 : vector<8x128xf32>
    %354 = arith.addf %353, %338 : vector<8x128xf32>
    %355 = arith.maximumf %342, %346 : vector<8x128xf32>
    %356 = arith.maximumf %350, %354 : vector<8x128xf32>
    %357 = arith.maximumf %355, %356 : vector<8x128xf32>
    %cst_41 = arith.constant 0.000000e+00 : f32
    %358 = vector.broadcast %cst_41 : f32 to vector<8x128xf32>
    %359 = arith.maximumf %357, %358 : vector<8x128xf32>
    %360 = arith.cmpf oeq, %342, %357 : vector<8x128xf32>
    %361 = arith.cmpf oeq, %346, %357 : vector<8x128xf32>
    %362 = arith.cmpf oeq, %350, %357 : vector<8x128xf32>
    %363 = arith.subf %333, %323 : vector<8x128xf32>
    %364 = arith.subf %308, %328 : vector<8x128xf32>
    %365 = arith.subf %313, %303 : vector<8x128xf32>
    %366 = arith.addf %313, %303 : vector<8x128xf32>
    %367 = arith.addf %308, %328 : vector<8x128xf32>
    %368 = arith.addf %333, %323 : vector<8x128xf32>
    %369 = arith.select %362, %364, %365 : vector<8x128xi1>, vector<8x128xf32>
    %370 = arith.select %361, %363, %369 : vector<8x128xi1>, vector<8x128xf32>
    %371 = arith.select %360, %359, %370 : vector<8x128xi1>, vector<8x128xf32>
    %372 = arith.select %362, %366, %367 : vector<8x128xi1>, vector<8x128xf32>
    %373 = arith.select %361, %359, %372 : vector<8x128xi1>, vector<8x128xf32>
    %374 = arith.select %360, %363, %373 : vector<8x128xi1>, vector<8x128xf32>
    %375 = arith.select %362, %359, %368 : vector<8x128xi1>, vector<8x128xf32>
    %376 = arith.select %361, %366, %375 : vector<8x128xi1>, vector<8x128xf32>
    %377 = arith.select %360, %364, %376 : vector<8x128xi1>, vector<8x128xf32>
    %378 = arith.select %362, %368, %359 : vector<8x128xi1>, vector<8x128xf32>
    %379 = arith.select %361, %367, %378 : vector<8x128xi1>, vector<8x128xf32>
    %380 = arith.select %360, %365, %379 : vector<8x128xi1>, vector<8x128xf32>
    %381 = arith.mulf %371, %31 : vector<8x128xf32>
    %382 = arith.mulf %374, %34 : vector<8x128xf32>
    %383 = arith.addf %381, %382 : vector<8x128xf32>
    %384 = arith.mulf %377, %37 : vector<8x128xf32>
    %385 = arith.addf %383, %384 : vector<8x128xf32>
    %386 = arith.mulf %380, %40 : vector<8x128xf32>
    %387 = arith.addf %385, %386 : vector<8x128xf32>
    %388 = arith.mulf %387, %387 : vector<8x128xf32>
    %cst_42 = arith.constant 2.500000e-01 : f32
    %389 = vector.broadcast %cst_42 : f32 to vector<8x128xf32>
    %390 = arith.mulf %389, %388 : vector<8x128xf32>
    %cst_43 = arith.constant 0.00999999977 : f32
    %391 = vector.broadcast %cst_43 : f32 to vector<8x128xf32>
    %392 = arith.maximumf %357, %391 : vector<8x128xf32>
    %393 = arith.divf %390, %392 : vector<8x128xf32>
    %cst_44 = arith.constant 1.000000e+00 : f32
    %394 = vector.broadcast %cst_44 : f32 to vector<8x128xf32>
    %395 = arith.subf %394, %393 : vector<8x128xf32>
    %396 = arith.minimumf %221, %395 : vector<8x128xf32>
    %c18 = arith.constant 18 : index
    %397 = memref.load %arg2[%c18] : memref<108xf32, #tpu.memory_space<smem>>
    %c54 = arith.constant 54 : index
    %398 = memref.load %arg2[%c54] : memref<108xf32, #tpu.memory_space<smem>>
    %399 = vector.broadcast %398 : f32 to vector<8x128xf32>
    %400 = vector.broadcast %397 : f32 to vector<8x128xf32>
    %401 = arith.select %45, %399, %400 : vector<8x128xi1>, vector<8x128xf32>
    %c90 = arith.constant 90 : index
    %402 = memref.load %arg2[%c90] : memref<108xf32, #tpu.memory_space<smem>>
    %403 = vector.broadcast %402 : f32 to vector<8x128xf32>
    %404 = arith.select %47, %403, %401 : vector<8x128xi1>, vector<8x128xf32>
    %c19 = arith.constant 19 : index
    %405 = memref.load %arg2[%c19] : memref<108xf32, #tpu.memory_space<smem>>
    %c55 = arith.constant 55 : index
    %406 = memref.load %arg2[%c55] : memref<108xf32, #tpu.memory_space<smem>>
    %407 = vector.broadcast %406 : f32 to vector<8x128xf32>
    %408 = vector.broadcast %405 : f32 to vector<8x128xf32>
    %409 = arith.select %45, %407, %408 : vector<8x128xi1>, vector<8x128xf32>
    %c91 = arith.constant 91 : index
    %410 = memref.load %arg2[%c91] : memref<108xf32, #tpu.memory_space<smem>>
    %411 = vector.broadcast %410 : f32 to vector<8x128xf32>
    %412 = arith.select %47, %411, %409 : vector<8x128xi1>, vector<8x128xf32>
    %c20 = arith.constant 20 : index
    %413 = memref.load %arg2[%c20] : memref<108xf32, #tpu.memory_space<smem>>
    %c56 = arith.constant 56 : index
    %414 = memref.load %arg2[%c56] : memref<108xf32, #tpu.memory_space<smem>>
    %415 = vector.broadcast %414 : f32 to vector<8x128xf32>
    %416 = vector.broadcast %413 : f32 to vector<8x128xf32>
    %417 = arith.select %45, %415, %416 : vector<8x128xi1>, vector<8x128xf32>
    %c92 = arith.constant 92 : index
    %418 = memref.load %arg2[%c92] : memref<108xf32, #tpu.memory_space<smem>>
    %419 = vector.broadcast %418 : f32 to vector<8x128xf32>
    %420 = arith.select %47, %419, %417 : vector<8x128xi1>, vector<8x128xf32>
    %c21 = arith.constant 21 : index
    %421 = memref.load %arg2[%c21] : memref<108xf32, #tpu.memory_space<smem>>
    %c57 = arith.constant 57 : index
    %422 = memref.load %arg2[%c57] : memref<108xf32, #tpu.memory_space<smem>>
    %423 = vector.broadcast %422 : f32 to vector<8x128xf32>
    %424 = vector.broadcast %421 : f32 to vector<8x128xf32>
    %425 = arith.select %45, %423, %424 : vector<8x128xi1>, vector<8x128xf32>
    %c93 = arith.constant 93 : index
    %426 = memref.load %arg2[%c93] : memref<108xf32, #tpu.memory_space<smem>>
    %427 = vector.broadcast %426 : f32 to vector<8x128xf32>
    %428 = arith.select %47, %427, %425 : vector<8x128xi1>, vector<8x128xf32>
    %c22 = arith.constant 22 : index
    %429 = memref.load %arg2[%c22] : memref<108xf32, #tpu.memory_space<smem>>
    %c58 = arith.constant 58 : index
    %430 = memref.load %arg2[%c58] : memref<108xf32, #tpu.memory_space<smem>>
    %431 = vector.broadcast %430 : f32 to vector<8x128xf32>
    %432 = vector.broadcast %429 : f32 to vector<8x128xf32>
    %433 = arith.select %45, %431, %432 : vector<8x128xi1>, vector<8x128xf32>
    %c94 = arith.constant 94 : index
    %434 = memref.load %arg2[%c94] : memref<108xf32, #tpu.memory_space<smem>>
    %435 = vector.broadcast %434 : f32 to vector<8x128xf32>
    %436 = arith.select %47, %435, %433 : vector<8x128xi1>, vector<8x128xf32>
    %c23 = arith.constant 23 : index
    %437 = memref.load %arg2[%c23] : memref<108xf32, #tpu.memory_space<smem>>
    %c59 = arith.constant 59 : index
    %438 = memref.load %arg2[%c59] : memref<108xf32, #tpu.memory_space<smem>>
    %439 = vector.broadcast %438 : f32 to vector<8x128xf32>
    %440 = vector.broadcast %437 : f32 to vector<8x128xf32>
    %441 = arith.select %45, %439, %440 : vector<8x128xi1>, vector<8x128xf32>
    %c95 = arith.constant 95 : index
    %442 = memref.load %arg2[%c95] : memref<108xf32, #tpu.memory_space<smem>>
    %443 = vector.broadcast %442 : f32 to vector<8x128xf32>
    %444 = arith.select %47, %443, %441 : vector<8x128xi1>, vector<8x128xf32>
    %c24 = arith.constant 24 : index
    %445 = memref.load %arg2[%c24] : memref<108xf32, #tpu.memory_space<smem>>
    %c60 = arith.constant 60 : index
    %446 = memref.load %arg2[%c60] : memref<108xf32, #tpu.memory_space<smem>>
    %447 = vector.broadcast %446 : f32 to vector<8x128xf32>
    %448 = vector.broadcast %445 : f32 to vector<8x128xf32>
    %449 = arith.select %45, %447, %448 : vector<8x128xi1>, vector<8x128xf32>
    %c96 = arith.constant 96 : index
    %450 = memref.load %arg2[%c96] : memref<108xf32, #tpu.memory_space<smem>>
    %451 = vector.broadcast %450 : f32 to vector<8x128xf32>
    %452 = arith.select %47, %451, %449 : vector<8x128xi1>, vector<8x128xf32>
    %c25 = arith.constant 25 : index
    %453 = memref.load %arg2[%c25] : memref<108xf32, #tpu.memory_space<smem>>
    %c61 = arith.constant 61 : index
    %454 = memref.load %arg2[%c61] : memref<108xf32, #tpu.memory_space<smem>>
    %455 = vector.broadcast %454 : f32 to vector<8x128xf32>
    %456 = vector.broadcast %453 : f32 to vector<8x128xf32>
    %457 = arith.select %45, %455, %456 : vector<8x128xi1>, vector<8x128xf32>
    %c97 = arith.constant 97 : index
    %458 = memref.load %arg2[%c97] : memref<108xf32, #tpu.memory_space<smem>>
    %459 = vector.broadcast %458 : f32 to vector<8x128xf32>
    %460 = arith.select %47, %459, %457 : vector<8x128xi1>, vector<8x128xf32>
    %c26 = arith.constant 26 : index
    %461 = memref.load %arg2[%c26] : memref<108xf32, #tpu.memory_space<smem>>
    %c62 = arith.constant 62 : index
    %462 = memref.load %arg2[%c62] : memref<108xf32, #tpu.memory_space<smem>>
    %463 = vector.broadcast %462 : f32 to vector<8x128xf32>
    %464 = vector.broadcast %461 : f32 to vector<8x128xf32>
    %465 = arith.select %45, %463, %464 : vector<8x128xi1>, vector<8x128xf32>
    %c98 = arith.constant 98 : index
    %466 = memref.load %arg2[%c98] : memref<108xf32, #tpu.memory_space<smem>>
    %467 = vector.broadcast %466 : f32 to vector<8x128xf32>
    %468 = arith.select %47, %467, %465 : vector<8x128xi1>, vector<8x128xf32>
    %469 = arith.mulf %404, %4 : vector<8x128xf32>
    %470 = arith.mulf %412, %13 : vector<8x128xf32>
    %471 = arith.addf %469, %470 : vector<8x128xf32>
    %472 = arith.mulf %420, %22 : vector<8x128xf32>
    %473 = arith.addf %471, %472 : vector<8x128xf32>
    %474 = arith.mulf %404, %7 : vector<8x128xf32>
    %475 = arith.mulf %412, %16 : vector<8x128xf32>
    %476 = arith.addf %474, %475 : vector<8x128xf32>
    %477 = arith.mulf %420, %25 : vector<8x128xf32>
    %478 = arith.addf %476, %477 : vector<8x128xf32>
    %479 = arith.mulf %404, %10 : vector<8x128xf32>
    %480 = arith.mulf %412, %19 : vector<8x128xf32>
    %481 = arith.addf %479, %480 : vector<8x128xf32>
    %482 = arith.mulf %420, %28 : vector<8x128xf32>
    %483 = arith.addf %481, %482 : vector<8x128xf32>
    %484 = arith.mulf %428, %4 : vector<8x128xf32>
    %485 = arith.mulf %436, %13 : vector<8x128xf32>
    %486 = arith.addf %484, %485 : vector<8x128xf32>
    %487 = arith.mulf %444, %22 : vector<8x128xf32>
    %488 = arith.addf %486, %487 : vector<8x128xf32>
    %489 = arith.mulf %428, %7 : vector<8x128xf32>
    %490 = arith.mulf %436, %16 : vector<8x128xf32>
    %491 = arith.addf %489, %490 : vector<8x128xf32>
    %492 = arith.mulf %444, %25 : vector<8x128xf32>
    %493 = arith.addf %491, %492 : vector<8x128xf32>
    %494 = arith.mulf %428, %10 : vector<8x128xf32>
    %495 = arith.mulf %436, %19 : vector<8x128xf32>
    %496 = arith.addf %494, %495 : vector<8x128xf32>
    %497 = arith.mulf %444, %28 : vector<8x128xf32>
    %498 = arith.addf %496, %497 : vector<8x128xf32>
    %499 = arith.mulf %452, %4 : vector<8x128xf32>
    %500 = arith.mulf %460, %13 : vector<8x128xf32>
    %501 = arith.addf %499, %500 : vector<8x128xf32>
    %502 = arith.mulf %468, %22 : vector<8x128xf32>
    %503 = arith.addf %501, %502 : vector<8x128xf32>
    %504 = arith.mulf %452, %7 : vector<8x128xf32>
    %505 = arith.mulf %460, %16 : vector<8x128xf32>
    %506 = arith.addf %504, %505 : vector<8x128xf32>
    %507 = arith.mulf %468, %25 : vector<8x128xf32>
    %508 = arith.addf %506, %507 : vector<8x128xf32>
    %509 = arith.mulf %452, %10 : vector<8x128xf32>
    %510 = arith.mulf %460, %19 : vector<8x128xf32>
    %511 = arith.addf %509, %510 : vector<8x128xf32>
    %512 = arith.mulf %468, %28 : vector<8x128xf32>
    %513 = arith.addf %511, %512 : vector<8x128xf32>
    %cst_45 = arith.constant 1.000000e+00 : f32
    %514 = vector.broadcast %cst_45 : f32 to vector<8x128xf32>
    %515 = arith.addf %514, %473 : vector<8x128xf32>
    %516 = arith.addf %515, %493 : vector<8x128xf32>
    %517 = arith.addf %516, %513 : vector<8x128xf32>
    %cst_46 = arith.constant 1.000000e+00 : f32
    %518 = vector.broadcast %cst_46 : f32 to vector<8x128xf32>
    %519 = arith.addf %518, %473 : vector<8x128xf32>
    %520 = arith.subf %519, %493 : vector<8x128xf32>
    %521 = arith.subf %520, %513 : vector<8x128xf32>
    %cst_47 = arith.constant 1.000000e+00 : f32
    %522 = vector.broadcast %cst_47 : f32 to vector<8x128xf32>
    %523 = arith.subf %522, %473 : vector<8x128xf32>
    %524 = arith.addf %523, %493 : vector<8x128xf32>
    %525 = arith.subf %524, %513 : vector<8x128xf32>
    %cst_48 = arith.constant 1.000000e+00 : f32
    %526 = vector.broadcast %cst_48 : f32 to vector<8x128xf32>
    %527 = arith.subf %526, %473 : vector<8x128xf32>
    %528 = arith.subf %527, %493 : vector<8x128xf32>
    %529 = arith.addf %528, %513 : vector<8x128xf32>
    %530 = arith.maximumf %517, %521 : vector<8x128xf32>
    %531 = arith.maximumf %525, %529 : vector<8x128xf32>
    %532 = arith.maximumf %530, %531 : vector<8x128xf32>
    %cst_49 = arith.constant 0.000000e+00 : f32
    %533 = vector.broadcast %cst_49 : f32 to vector<8x128xf32>
    %534 = arith.maximumf %532, %533 : vector<8x128xf32>
    %535 = arith.cmpf oeq, %517, %532 : vector<8x128xf32>
    %536 = arith.cmpf oeq, %521, %532 : vector<8x128xf32>
    %537 = arith.cmpf oeq, %525, %532 : vector<8x128xf32>
    %538 = arith.subf %508, %498 : vector<8x128xf32>
    %539 = arith.subf %483, %503 : vector<8x128xf32>
    %540 = arith.subf %488, %478 : vector<8x128xf32>
    %541 = arith.addf %488, %478 : vector<8x128xf32>
    %542 = arith.addf %483, %503 : vector<8x128xf32>
    %543 = arith.addf %508, %498 : vector<8x128xf32>
    %544 = arith.select %537, %539, %540 : vector<8x128xi1>, vector<8x128xf32>
    %545 = arith.select %536, %538, %544 : vector<8x128xi1>, vector<8x128xf32>
    %546 = arith.select %535, %534, %545 : vector<8x128xi1>, vector<8x128xf32>
    %547 = arith.select %537, %541, %542 : vector<8x128xi1>, vector<8x128xf32>
    %548 = arith.select %536, %534, %547 : vector<8x128xi1>, vector<8x128xf32>
    %549 = arith.select %535, %538, %548 : vector<8x128xi1>, vector<8x128xf32>
    %550 = arith.select %537, %534, %543 : vector<8x128xi1>, vector<8x128xf32>
    %551 = arith.select %536, %541, %550 : vector<8x128xi1>, vector<8x128xf32>
    %552 = arith.select %535, %539, %551 : vector<8x128xi1>, vector<8x128xf32>
    %553 = arith.select %537, %543, %534 : vector<8x128xi1>, vector<8x128xf32>
    %554 = arith.select %536, %542, %553 : vector<8x128xi1>, vector<8x128xf32>
    %555 = arith.select %535, %540, %554 : vector<8x128xi1>, vector<8x128xf32>
    %556 = arith.mulf %546, %31 : vector<8x128xf32>
    %557 = arith.mulf %549, %34 : vector<8x128xf32>
    %558 = arith.addf %556, %557 : vector<8x128xf32>
    %559 = arith.mulf %552, %37 : vector<8x128xf32>
    %560 = arith.addf %558, %559 : vector<8x128xf32>
    %561 = arith.mulf %555, %40 : vector<8x128xf32>
    %562 = arith.addf %560, %561 : vector<8x128xf32>
    %563 = arith.mulf %562, %562 : vector<8x128xf32>
    %cst_50 = arith.constant 2.500000e-01 : f32
    %564 = vector.broadcast %cst_50 : f32 to vector<8x128xf32>
    %565 = arith.mulf %564, %563 : vector<8x128xf32>
    %cst_51 = arith.constant 0.00999999977 : f32
    %566 = vector.broadcast %cst_51 : f32 to vector<8x128xf32>
    %567 = arith.maximumf %532, %566 : vector<8x128xf32>
    %568 = arith.divf %565, %567 : vector<8x128xf32>
    %cst_52 = arith.constant 1.000000e+00 : f32
    %569 = vector.broadcast %cst_52 : f32 to vector<8x128xf32>
    %570 = arith.subf %569, %568 : vector<8x128xf32>
    %571 = arith.minimumf %396, %570 : vector<8x128xf32>
    %c27 = arith.constant 27 : index
    %572 = memref.load %arg2[%c27] : memref<108xf32, #tpu.memory_space<smem>>
    %c63 = arith.constant 63 : index
    %573 = memref.load %arg2[%c63] : memref<108xf32, #tpu.memory_space<smem>>
    %574 = vector.broadcast %573 : f32 to vector<8x128xf32>
    %575 = vector.broadcast %572 : f32 to vector<8x128xf32>
    %576 = arith.select %45, %574, %575 : vector<8x128xi1>, vector<8x128xf32>
    %c99 = arith.constant 99 : index
    %577 = memref.load %arg2[%c99] : memref<108xf32, #tpu.memory_space<smem>>
    %578 = vector.broadcast %577 : f32 to vector<8x128xf32>
    %579 = arith.select %47, %578, %576 : vector<8x128xi1>, vector<8x128xf32>
    %c28 = arith.constant 28 : index
    %580 = memref.load %arg2[%c28] : memref<108xf32, #tpu.memory_space<smem>>
    %c64 = arith.constant 64 : index
    %581 = memref.load %arg2[%c64] : memref<108xf32, #tpu.memory_space<smem>>
    %582 = vector.broadcast %581 : f32 to vector<8x128xf32>
    %583 = vector.broadcast %580 : f32 to vector<8x128xf32>
    %584 = arith.select %45, %582, %583 : vector<8x128xi1>, vector<8x128xf32>
    %c100 = arith.constant 100 : index
    %585 = memref.load %arg2[%c100] : memref<108xf32, #tpu.memory_space<smem>>
    %586 = vector.broadcast %585 : f32 to vector<8x128xf32>
    %587 = arith.select %47, %586, %584 : vector<8x128xi1>, vector<8x128xf32>
    %c29 = arith.constant 29 : index
    %588 = memref.load %arg2[%c29] : memref<108xf32, #tpu.memory_space<smem>>
    %c65 = arith.constant 65 : index
    %589 = memref.load %arg2[%c65] : memref<108xf32, #tpu.memory_space<smem>>
    %590 = vector.broadcast %589 : f32 to vector<8x128xf32>
    %591 = vector.broadcast %588 : f32 to vector<8x128xf32>
    %592 = arith.select %45, %590, %591 : vector<8x128xi1>, vector<8x128xf32>
    %c101 = arith.constant 101 : index
    %593 = memref.load %arg2[%c101] : memref<108xf32, #tpu.memory_space<smem>>
    %594 = vector.broadcast %593 : f32 to vector<8x128xf32>
    %595 = arith.select %47, %594, %592 : vector<8x128xi1>, vector<8x128xf32>
    %c30 = arith.constant 30 : index
    %596 = memref.load %arg2[%c30] : memref<108xf32, #tpu.memory_space<smem>>
    %c66 = arith.constant 66 : index
    %597 = memref.load %arg2[%c66] : memref<108xf32, #tpu.memory_space<smem>>
    %598 = vector.broadcast %597 : f32 to vector<8x128xf32>
    %599 = vector.broadcast %596 : f32 to vector<8x128xf32>
    %600 = arith.select %45, %598, %599 : vector<8x128xi1>, vector<8x128xf32>
    %c102 = arith.constant 102 : index
    %601 = memref.load %arg2[%c102] : memref<108xf32, #tpu.memory_space<smem>>
    %602 = vector.broadcast %601 : f32 to vector<8x128xf32>
    %603 = arith.select %47, %602, %600 : vector<8x128xi1>, vector<8x128xf32>
    %c31 = arith.constant 31 : index
    %604 = memref.load %arg2[%c31] : memref<108xf32, #tpu.memory_space<smem>>
    %c67 = arith.constant 67 : index
    %605 = memref.load %arg2[%c67] : memref<108xf32, #tpu.memory_space<smem>>
    %606 = vector.broadcast %605 : f32 to vector<8x128xf32>
    %607 = vector.broadcast %604 : f32 to vector<8x128xf32>
    %608 = arith.select %45, %606, %607 : vector<8x128xi1>, vector<8x128xf32>
    %c103 = arith.constant 103 : index
    %609 = memref.load %arg2[%c103] : memref<108xf32, #tpu.memory_space<smem>>
    %610 = vector.broadcast %609 : f32 to vector<8x128xf32>
    %611 = arith.select %47, %610, %608 : vector<8x128xi1>, vector<8x128xf32>
    %c32 = arith.constant 32 : index
    %612 = memref.load %arg2[%c32] : memref<108xf32, #tpu.memory_space<smem>>
    %c68 = arith.constant 68 : index
    %613 = memref.load %arg2[%c68] : memref<108xf32, #tpu.memory_space<smem>>
    %614 = vector.broadcast %613 : f32 to vector<8x128xf32>
    %615 = vector.broadcast %612 : f32 to vector<8x128xf32>
    %616 = arith.select %45, %614, %615 : vector<8x128xi1>, vector<8x128xf32>
    %c104 = arith.constant 104 : index
    %617 = memref.load %arg2[%c104] : memref<108xf32, #tpu.memory_space<smem>>
    %618 = vector.broadcast %617 : f32 to vector<8x128xf32>
    %619 = arith.select %47, %618, %616 : vector<8x128xi1>, vector<8x128xf32>
    %c33 = arith.constant 33 : index
    %620 = memref.load %arg2[%c33] : memref<108xf32, #tpu.memory_space<smem>>
    %c69 = arith.constant 69 : index
    %621 = memref.load %arg2[%c69] : memref<108xf32, #tpu.memory_space<smem>>
    %622 = vector.broadcast %621 : f32 to vector<8x128xf32>
    %623 = vector.broadcast %620 : f32 to vector<8x128xf32>
    %624 = arith.select %45, %622, %623 : vector<8x128xi1>, vector<8x128xf32>
    %c105 = arith.constant 105 : index
    %625 = memref.load %arg2[%c105] : memref<108xf32, #tpu.memory_space<smem>>
    %626 = vector.broadcast %625 : f32 to vector<8x128xf32>
    %627 = arith.select %47, %626, %624 : vector<8x128xi1>, vector<8x128xf32>
    %c34 = arith.constant 34 : index
    %628 = memref.load %arg2[%c34] : memref<108xf32, #tpu.memory_space<smem>>
    %c70 = arith.constant 70 : index
    %629 = memref.load %arg2[%c70] : memref<108xf32, #tpu.memory_space<smem>>
    %630 = vector.broadcast %629 : f32 to vector<8x128xf32>
    %631 = vector.broadcast %628 : f32 to vector<8x128xf32>
    %632 = arith.select %45, %630, %631 : vector<8x128xi1>, vector<8x128xf32>
    %c106 = arith.constant 106 : index
    %633 = memref.load %arg2[%c106] : memref<108xf32, #tpu.memory_space<smem>>
    %634 = vector.broadcast %633 : f32 to vector<8x128xf32>
    %635 = arith.select %47, %634, %632 : vector<8x128xi1>, vector<8x128xf32>
    %c35 = arith.constant 35 : index
    %636 = memref.load %arg2[%c35] : memref<108xf32, #tpu.memory_space<smem>>
    %c71 = arith.constant 71 : index
    %637 = memref.load %arg2[%c71] : memref<108xf32, #tpu.memory_space<smem>>
    %638 = vector.broadcast %637 : f32 to vector<8x128xf32>
    %639 = vector.broadcast %636 : f32 to vector<8x128xf32>
    %640 = arith.select %45, %638, %639 : vector<8x128xi1>, vector<8x128xf32>
    %c107 = arith.constant 107 : index
    %641 = memref.load %arg2[%c107] : memref<108xf32, #tpu.memory_space<smem>>
    %642 = vector.broadcast %641 : f32 to vector<8x128xf32>
    %643 = arith.select %47, %642, %640 : vector<8x128xi1>, vector<8x128xf32>
    %644 = arith.mulf %579, %4 : vector<8x128xf32>
    %645 = arith.mulf %587, %13 : vector<8x128xf32>
    %646 = arith.addf %644, %645 : vector<8x128xf32>
    %647 = arith.mulf %595, %22 : vector<8x128xf32>
    %648 = arith.addf %646, %647 : vector<8x128xf32>
    %649 = arith.mulf %579, %7 : vector<8x128xf32>
    %650 = arith.mulf %587, %16 : vector<8x128xf32>
    %651 = arith.addf %649, %650 : vector<8x128xf32>
    %652 = arith.mulf %595, %25 : vector<8x128xf32>
    %653 = arith.addf %651, %652 : vector<8x128xf32>
    %654 = arith.mulf %579, %10 : vector<8x128xf32>
    %655 = arith.mulf %587, %19 : vector<8x128xf32>
    %656 = arith.addf %654, %655 : vector<8x128xf32>
    %657 = arith.mulf %595, %28 : vector<8x128xf32>
    %658 = arith.addf %656, %657 : vector<8x128xf32>
    %659 = arith.mulf %603, %4 : vector<8x128xf32>
    %660 = arith.mulf %611, %13 : vector<8x128xf32>
    %661 = arith.addf %659, %660 : vector<8x128xf32>
    %662 = arith.mulf %619, %22 : vector<8x128xf32>
    %663 = arith.addf %661, %662 : vector<8x128xf32>
    %664 = arith.mulf %603, %7 : vector<8x128xf32>
    %665 = arith.mulf %611, %16 : vector<8x128xf32>
    %666 = arith.addf %664, %665 : vector<8x128xf32>
    %667 = arith.mulf %619, %25 : vector<8x128xf32>
    %668 = arith.addf %666, %667 : vector<8x128xf32>
    %669 = arith.mulf %603, %10 : vector<8x128xf32>
    %670 = arith.mulf %611, %19 : vector<8x128xf32>
    %671 = arith.addf %669, %670 : vector<8x128xf32>
    %672 = arith.mulf %619, %28 : vector<8x128xf32>
    %673 = arith.addf %671, %672 : vector<8x128xf32>
    %674 = arith.mulf %627, %4 : vector<8x128xf32>
    %675 = arith.mulf %635, %13 : vector<8x128xf32>
    %676 = arith.addf %674, %675 : vector<8x128xf32>
    %677 = arith.mulf %643, %22 : vector<8x128xf32>
    %678 = arith.addf %676, %677 : vector<8x128xf32>
    %679 = arith.mulf %627, %7 : vector<8x128xf32>
    %680 = arith.mulf %635, %16 : vector<8x128xf32>
    %681 = arith.addf %679, %680 : vector<8x128xf32>
    %682 = arith.mulf %643, %25 : vector<8x128xf32>
    %683 = arith.addf %681, %682 : vector<8x128xf32>
    %684 = arith.mulf %627, %10 : vector<8x128xf32>
    %685 = arith.mulf %635, %19 : vector<8x128xf32>
    %686 = arith.addf %684, %685 : vector<8x128xf32>
    %687 = arith.mulf %643, %28 : vector<8x128xf32>
    %688 = arith.addf %686, %687 : vector<8x128xf32>
    %cst_53 = arith.constant 1.000000e+00 : f32
    %689 = vector.broadcast %cst_53 : f32 to vector<8x128xf32>
    %690 = arith.addf %689, %648 : vector<8x128xf32>
    %691 = arith.addf %690, %668 : vector<8x128xf32>
    %692 = arith.addf %691, %688 : vector<8x128xf32>
    %cst_54 = arith.constant 1.000000e+00 : f32
    %693 = vector.broadcast %cst_54 : f32 to vector<8x128xf32>
    %694 = arith.addf %693, %648 : vector<8x128xf32>
    %695 = arith.subf %694, %668 : vector<8x128xf32>
    %696 = arith.subf %695, %688 : vector<8x128xf32>
    %cst_55 = arith.constant 1.000000e+00 : f32
    %697 = vector.broadcast %cst_55 : f32 to vector<8x128xf32>
    %698 = arith.subf %697, %648 : vector<8x128xf32>
    %699 = arith.addf %698, %668 : vector<8x128xf32>
    %700 = arith.subf %699, %688 : vector<8x128xf32>
    %cst_56 = arith.constant 1.000000e+00 : f32
    %701 = vector.broadcast %cst_56 : f32 to vector<8x128xf32>
    %702 = arith.subf %701, %648 : vector<8x128xf32>
    %703 = arith.subf %702, %668 : vector<8x128xf32>
    %704 = arith.addf %703, %688 : vector<8x128xf32>
    %705 = arith.maximumf %692, %696 : vector<8x128xf32>
    %706 = arith.maximumf %700, %704 : vector<8x128xf32>
    %707 = arith.maximumf %705, %706 : vector<8x128xf32>
    %cst_57 = arith.constant 0.000000e+00 : f32
    %708 = vector.broadcast %cst_57 : f32 to vector<8x128xf32>
    %709 = arith.maximumf %707, %708 : vector<8x128xf32>
    %710 = arith.cmpf oeq, %692, %707 : vector<8x128xf32>
    %711 = arith.cmpf oeq, %696, %707 : vector<8x128xf32>
    %712 = arith.cmpf oeq, %700, %707 : vector<8x128xf32>
    %713 = arith.subf %683, %673 : vector<8x128xf32>
    %714 = arith.subf %658, %678 : vector<8x128xf32>
    %715 = arith.subf %663, %653 : vector<8x128xf32>
    %716 = arith.addf %663, %653 : vector<8x128xf32>
    %717 = arith.addf %658, %678 : vector<8x128xf32>
    %718 = arith.addf %683, %673 : vector<8x128xf32>
    %719 = arith.select %712, %714, %715 : vector<8x128xi1>, vector<8x128xf32>
    %720 = arith.select %711, %713, %719 : vector<8x128xi1>, vector<8x128xf32>
    %721 = arith.select %710, %709, %720 : vector<8x128xi1>, vector<8x128xf32>
    %722 = arith.select %712, %716, %717 : vector<8x128xi1>, vector<8x128xf32>
    %723 = arith.select %711, %709, %722 : vector<8x128xi1>, vector<8x128xf32>
    %724 = arith.select %710, %713, %723 : vector<8x128xi1>, vector<8x128xf32>
    %725 = arith.select %712, %709, %718 : vector<8x128xi1>, vector<8x128xf32>
    %726 = arith.select %711, %716, %725 : vector<8x128xi1>, vector<8x128xf32>
    %727 = arith.select %710, %714, %726 : vector<8x128xi1>, vector<8x128xf32>
    %728 = arith.select %712, %718, %709 : vector<8x128xi1>, vector<8x128xf32>
    %729 = arith.select %711, %717, %728 : vector<8x128xi1>, vector<8x128xf32>
    %730 = arith.select %710, %715, %729 : vector<8x128xi1>, vector<8x128xf32>
    %731 = arith.mulf %721, %31 : vector<8x128xf32>
    %732 = arith.mulf %724, %34 : vector<8x128xf32>
    %733 = arith.addf %731, %732 : vector<8x128xf32>
    %734 = arith.mulf %727, %37 : vector<8x128xf32>
    %735 = arith.addf %733, %734 : vector<8x128xf32>
    %736 = arith.mulf %730, %40 : vector<8x128xf32>
    %737 = arith.addf %735, %736 : vector<8x128xf32>
    %738 = arith.mulf %737, %737 : vector<8x128xf32>
    %cst_58 = arith.constant 2.500000e-01 : f32
    %739 = vector.broadcast %cst_58 : f32 to vector<8x128xf32>
    %740 = arith.mulf %739, %738 : vector<8x128xf32>
    %cst_59 = arith.constant 0.00999999977 : f32
    %741 = vector.broadcast %cst_59 : f32 to vector<8x128xf32>
    %742 = arith.maximumf %707, %741 : vector<8x128xf32>
    %743 = arith.divf %740, %742 : vector<8x128xf32>
    %cst_60 = arith.constant 1.000000e+00 : f32
    %744 = vector.broadcast %cst_60 : f32 to vector<8x128xf32>
    %745 = arith.subf %744, %743 : vector<8x128xf32>
    %746 = arith.minimumf %571, %745 : vector<8x128xf32>
    %c0_61 = arith.constant 0 : index
    %747 = arith.index_cast %1 : i32 to index
    %748 = vector.load %arg3[%c0_61, %747] : memref<8x128xf32, #tpu.memory_space<vmem>>, vector<8x128xf32>
    tpu.vector_store %arg3[%c0_61, %747], %746 {strides = array<i32>} : memref<8x128xf32, #tpu.memory_space<vmem>>, vector<8x128xf32>,
    %c1_i32 = arith.constant 1 : i32
    return
  }
  func.func @transform_0(%arg0: i32) -> (i32, i32, i32) {
    %c0_i32 = arith.constant 0 : i32
    %c0_i32_0 = arith.constant 0 : i32
    %c0_i32_1 = arith.constant 0 : i32
    return %c0_i32, %c0_i32_0, %arg0 : i32, i32, i32
  }
  func.func @transform_1(%arg0: i32) -> i32 {
    %c0_i32 = arith.constant 0 : i32
    %c0_i32_0 = arith.constant 0 : i32
    return %c0_i32 : i32
  }
  func.func @transform_2(%arg0: i32) -> (i32, i32) {
    %c0_i32 = arith.constant 0 : i32
    %c0_i32_0 = arith.constant 0 : i32
    return %c0_i32, %arg0 : i32, i32
  }
}

</mosaic_0001>

<bundles_post_ra>
// kernel: tpu_custom_call.1
= control target key start
LH: loop header
LB: loop body
LE: loop exit
PB: predicated region body
PF: predicated region fallthrough
CT: control target
= control target key end

     0   :  { %7 = vsyncpa [#allocation3], 0  ;;  %s1975_s0 = inlined_call_operand.hbm [shape: f32[14,8,128], index: 0, kind: input, shape index: {}]   ;;  %s1976_s1 = inlined_call_operand.hbm [shape: f32[108], index: 1, kind: input, shape index: {}]   ;;  %s1977_s2 = inlined_call_operand.hbm [shape: f32[8,128], index: 2, kind: output, shape index: {}]  }
   0x1   :  { %8 = vsyncpa [#allocation5], 0 }
   0x2   :  { %9 = vsyncpa [#allocation4], 0  ;;  %s14_s11 = sshll.u32 %s1975_s0, 4  ;;  %s1025_s12 = smov [#allocation2]   ;;  %s15_s11 = int_to_ptr.hbm [resolvable:$true] %s14_s11 }
   0x3   :  { %s16_s13 = sshll.u32 %s1025_s12, 4  ;;  %s28_s16 = sshll.u32 %s1976_s1, 4  ;;  %s17_s13 = int_to_ptr.vmem [resolvable:$true] %s16_s13  ;;  %s29_s16 = int_to_ptr.hbm [resolvable:$true] %s28_s16 }
   0x4   :  { %s1026_s17 = smov 128   ;;  %s1027_s18 = smov 8  }
   0x5   :  { %22 = dma.hbm_to_vmem [thread:$0]  %s15_s11, 1792, %s17_s13, [#allocation3], %s1026_s17, %s1026_s17, %s1027_s18  }
   0x6   :  { %s1028_s19 = smov [#allocation6]  }
   0x7   :  { %31 = dma.hbm_to_smem %s29_s16, 16, %s1028_s19, [#allocation5]  }
   0x8   :  { %1019 = dma.done.wait [#allocation3], 1792  }
   0x9   :  { %1020 = vsyncadd [#allocation3], 4294965504 }
   0xa   :  { %1021 = dma.done.wait [#allocation5], 16  }
   0xb   :  { %1022 = vsyncadd [#allocation5], 4294967280 }
   0xc   :  { %40 = sfence }
   0xd   :  { %s83_s0 = sld [smem:[#allocation6]]  ;;  %v1051_v0 = vld [vmem:[#allocation2 + $0x68] sm:$0xff]  ;;  %v1063_v11 = vld [vmem:[#allocation2] sm:$0xff]  ;;  %v1065_v12 = vld [vmem:[#allocation2 + $0x18] sm:$0xff] }
   0xe   :  { %s830_s20 = sld [smem:[#allocation6 + $0x24]]  ;;  %vm81_vm0 = vcmp.eq.f32.partialorder %v1051_v0, 1.0  ;;  %vm82_vm1 = vcmp.eq.f32.partialorder %v1051_v0, 2.0  ;;  %v1087_v24 = vld [vmem:[#allocation2 + $0x30] sm:$0xff]  ;;  %v1093_v27 = vld [vmem:[#allocation2 + $0x8] sm:$0xff]  ;;  %v1095_v28 = vld [vmem:[#allocation2 + $0x20] sm:$0xff] }
   0xf   :  { %s831_s21 = sld [smem:[#allocation6 + $0x48]]  ;;  %v1115_v41 = vld [vmem:[#allocation2 + $0x38] sm:$0xff]  ;;  %v1122_v45 = vld [vmem:[#allocation2 + $0x10] sm:$0xff]  ;;  %v1130_v53 = vld [vmem:[#allocation2 + $0x28] sm:$0xff] }
  0x10   :  { %s832_s22 = sld [smem:[#allocation6 + $0x1]]  ;;  %v1139_v60 = vld [vmem:[#allocation2 + $0x40] sm:$0xff] }
  0x11   :  { %s833_s23 = sld [smem:[#allocation6 + $0x25]] }
  0x12   :  { %s834_s24 = sld [smem:[#allocation6 + $0x49]] }
  0x13   :  { %s835_s1 = sld [smem:[#allocation6 + $0x2]]  ;;  %v86_v2 = vstv %s83_s0 }
  0x14   :  { %s836_s25 = sld [smem:[#allocation6 + $0x26]]  ;;  %v85_v1 = vstv %s830_s20 }
  0x15   :  { %s1053_s26 = sld [smem:[#allocation6 + $0x4a]]  ;;  %v87_v5 = vsel %vm81_vm0, %v85_v1, %v86_v2  ;;  %v89_v6 = vstv %s831_s21 }
  0x16   :  { %v94_v3 = vstv %s832_s22  ;;  %s838_s27 = sld [smem:[#allocation6 + $0x3]]  ;;  %v1069_v13 = vsel %vm82_vm1, %v89_v6, %v87_v5 }
  0x17   :  { %v93_v4 = vstv %s833_s23  ;;  %s839_s28 = sld [smem:[#allocation6 + $0x27]]  ;;  %v155_v22 = vmul.f32 %v1069_v13, %v1063_v11 }
  0x18   :  { %s1057_s29 = sld [smem:[#allocation6 + $0x4b]]  ;;  %v95_v7 = vsel %vm81_vm0, %v93_v4, %v94_v3  ;;  %v97_v8 = vstv %s834_s24 }
  0x19   :  { %s841_s30 = sld [smem:[#allocation6 + $0x4]]  ;;  %v102_v10 = vstv %s835_s1  ;;  %v1073_v14 = vsel %vm82_vm1, %v97_v8, %v95_v7  ;;  %v160_v7 = vmul.f32 %v1069_v13, %v1093_v27 }
  0x1a   :  { %v101_v9 = vstv %s836_s25  ;;  %s842_s3 = sld [smem:[#allocation6 + $0x28]]  ;;  %v156_v23 = vmul.f32 %v1073_v14, %v1065_v12  ;;  %v161_v8 = vmul.f32 %v1073_v14, %v1095_v28 }
  0x1b   :  { %s843_s4 = sld [smem:[#allocation6 + $0x4c]]  ;;  %v103_v16 = vsel %vm81_vm0, %v101_v9, %v102_v10  ;;  %v105_v17 = vstv %s1053_s26 }
  0x1c   :  { %v110_v15 = vstv %s838_s27  ;;  %s844_s5 = sld [smem:[#allocation6 + $0x5]]  ;;  %v1091_v25 = vsel %vm82_vm1, %v105_v17, %v103_v16  ;;  %v157_v35 = vadd.f32 %v156_v23, %v155_v22  ;;  %v166_v22 = vmul.f32 %v1073_v14, %v1130_v53 }
  0x1d   :  { %v109_v18 = vstv %s839_s28  ;;  %s845_s6 = sld [smem:[#allocation6 + $0x29]]  ;;  %v158_v36 = vmul.f32 %v1091_v25, %v1087_v24 }
  0x1e   :  { %v111_v19 = vsel %vm81_vm0, %v109_v18, %v110_v15  ;;  %v113_v20 = vstv %s1057_s29  ;;  %s846_s7 = sld [smem:[#allocation6 + $0x4d]] }
  0x1f   :  { %v118_v21 = vstv %s841_s30  ;;  %s1081_s8 = sld [smem:[#allocation6 + $0x6]]  ;;  %v1099_v29 = vsel %vm82_vm1, %v113_v20, %v111_v19  ;;  %v159_v48 = vadd.f32 %v158_v36, %v157_v35 }
  0x20   :  { %v117_v26 = vstv %s842_s3  ;;  %s848_s9 = sld [smem:[#allocation6 + $0x2a]]  ;;  %v175_v39 = vmul.f32 %v1099_v29, %v1093_v27  ;;  %v170_v10 = vmul.f32 %v1099_v29, %v1063_v11 }
  0x21   :  { %v119_v30 = vsel %vm81_vm0, %v117_v26, %v118_v21  ;;  %v121_v31 = vstv %s843_s4  ;;  %s849_s10 = sld [smem:[#allocation6 + $0x4e]]  ;;  %v200_v1 = vadd.f32 1.0, %v159_v48  ;;  %v205_v4 = vsub.f32 1.0, %v159_v48 }
  0x22   :  { %v1105_v32 = vsel %vm82_vm1, %v121_v31, %v119_v30  ;;  %v126_v33 = vstv %s844_s5  ;;  %s850_s11 = sld [smem:[#allocation6 + $0x7]]  ;;  %v165_v21 = vmul.f32 %v1069_v13, %v1122_v45  ;;  %v162_v30 = vadd.f32 %v161_v8, %v160_v7 }
  0x23   :  { %v125_v34 = vstv %s845_s6  ;;  %s851_s12 = sld [smem:[#allocation6 + $0x2b]]  ;;  %v176_v40 = vmul.f32 %v1105_v32, %v1095_v28  ;;  %v171_v15 = vmul.f32 %v1105_v32, %v1065_v12  ;;  %v163_v31 = vmul.f32 %v1091_v25, %v1115_v41 }
  0x24   :  { %v127_v37 = vsel %vm81_vm0, %v125_v34, %v126_v33  ;;  %v129_v38 = vstv %s846_s7  ;;  %s852_s13 = sld [smem:[#allocation6 + $0x4f]]  ;;  %v180_v33 = vmul.f32 %v1099_v29, %v1122_v45  ;;  %v181_v34 = vmul.f32 %v1105_v32, %v1130_v53 }
  0x25   :  { %v1119_v42 = vsel %vm82_vm1, %v129_v38, %v127_v37  ;;  %v134_v43 = vstv %s1081_s8  ;;  %s853_s14 = sld [smem:[#allocation6 + $0x8]]  ;;  %v177_v51 = vadd.f32 %v176_v40, %v175_v39  ;;  %v172_v13 = vadd.f32 %v171_v15, %v170_v10 }
  0x26   :  { %v133_v44 = vstv %s848_s9  ;;  %s854_s15 = sld [smem:[#allocation6 + $0x2c]]  ;;  %v178_v52 = vmul.f32 %v1119_v42, %v1115_v41  ;;  %v173_v14 = vmul.f32 %v1119_v42, %v1087_v24  ;;  %v167_v39 = vadd.f32 %v166_v22, %v165_v21 }
  0x27   :  { %v135_v46 = vsel %vm81_vm0, %v133_v44, %v134_v43  ;;  %v137_v47 = vstv %s849_s10  ;;  %s855_s16 = sld [smem:[#allocation6 + $0x50]]  ;;  %v168_v40 = vmul.f32 %v1091_v25, %v1139_v60 }
  0x28   :  { %v138_v49 = vsel %vm82_vm1, %v137_v47, %v135_v46  ;;  %v142_v50 = vstv %s850_s11  ;;  %s1137_s17 = sld [smem:[#allocation6 + $0x9]]  ;;  %v179_v62 = vadd.f32 %v178_v52, %v177_v51  ;;  %v164_v46 = vadd.f32 %v163_v31, %v162_v30 }
  0x29   :  { %v141_v54 = vstv %s851_s12  ;;  %v195_v57 = vmul.f32 %v138_v49, %v1122_v45  ;;  %s1142_s18 = sld [smem:[#allocation6 + $0x2d]]  ;;  %v185_v23 = vmul.f32 %v138_v49, %v1063_v11  ;;  %v190_v35 = vmul.f32 %v138_v49, %v1093_v27 }
  0x2a   :  { %v143_v55 = vsel %vm81_vm0, %v141_v54, %v142_v50  ;;  %v145_v56 = vstv %s852_s13  ;;  %s1146_s19 = sld [smem:[#allocation6 + $0x51]]  ;;  %v201_v16 = vadd.f32 %v200_v1, %v179_v62  ;;  %v203_v18 = vsub.f32 %v200_v1, %v179_v62 }
  0x2b   :  { %v146_v58 = vsel %vm82_vm1, %v145_v56, %v143_v55  ;;  %v150_v59 = vstv %s853_s14  ;;  %s1150_s0 = sld [smem:[#allocation6 + $0xa]]  ;;  %v206_v19 = vadd.f32 %v205_v4, %v179_v62  ;;  %v208_v20 = vsub.f32 %v205_v4, %v179_v62 }
  0x2c   :  { %v149_v61 = vstv %s854_s15  ;;  %v196_v63 = vmul.f32 %v146_v58, %v1130_v53  ;;  %s1157_s20 = sld [smem:[#allocation6 + $0x2e]]  ;;  %v186_v26 = vmul.f32 %v146_v58, %v1065_v12  ;;  %v191_v36 = vmul.f32 %v146_v58, %v1095_v28 }
  0x2d   :  { %v151_v2 = vsel %vm81_vm0, %v149_v61, %v150_v59  ;;  %v153_v3 = vstv %s855_s16  ;;  %s1163_s21 = sld [smem:[#allocation6 + $0x52]]  ;;  %v182_v47 = vadd.f32 %v181_v34, %v180_v33  ;;  %v174_v50 = vadd.f32 %v173_v14, %v172_v13 }
  0x2e   :  { %v154_v5 = vsel %vm82_vm1, %v153_v3, %v151_v2  ;;  %v197_v6 = vadd.f32 %v196_v63, %v195_v57  ;;  %s1165_s22 = sld [smem:[#allocation6 + $0xb]]  ;;  %v187_v43 = vadd.f32 %v186_v26, %v185_v23  ;;  %v264_v49 = vstv %s1137_s17 }
  0x2f   :  { %v198_v9 = vmul.f32 %v154_v5, %v1139_v60  ;;  %s1173_s23 = sld [smem:[#allocation6 + $0x2f]]  ;;  %v188_v44 = vmul.f32 %v154_v5, %v1087_v24  ;;  %v263_v48 = vstv %s1142_s18  ;;  %v183_v51 = vmul.f32 %v1119_v42, %v1139_v60 }
  0x30   :  { %s1181_s24 = sld [smem:[#allocation6 + $0x53]]  ;;  %v192_v52 = vadd.f32 %v191_v36, %v190_v35  ;;  %v193_v25 = vmul.f32 %v154_v5, %v1115_v41  ;;  %v169_v56 = vadd.f32 %v168_v40, %v167_v39  ;;  %v265_v58 = vsel %vm81_vm0, %v263_v48, %v264_v49 }
  0x31   :  { %v199_v17 = vadd.f32 %v198_v9, %v197_v6  ;;  %s1187_s1 = sld [smem:[#allocation6 + $0xc]]  ;;  %v189_v57 = vadd.f32 %v188_v44, %v187_v43  ;;  %v267_v42 = vstv %s1146_s19  ;;  %v272_v61 = vstv %s1150_s0 }
  0x32   :  { %s1195_s25 = sld [smem:[#allocation6 + $0x30]]  ;;  %v271_v59 = vstv %s1157_s20  ;;  %v184_v62 = vadd.f32 %v183_v51, %v182_v47  ;;  %v194_v63 = vadd.f32 %v193_v25, %v192_v52  ;;  %v1225_v1 = vsub.f32 %v174_v50, %v164_v46 }
  0x33   :  { %v1189_v37 = vadd.f32 %v201_v16, %v199_v17  ;;  %v1191_v29 = vsub.f32 %v203_v18, %v199_v17  ;;  %v1193_v38 = vsub.f32 %v206_v19, %v199_v17  ;;  %v209_v32 = vadd.f32 %v208_v20, %v199_v17  ;;  %s1200_s26 = sld [smem:[#allocation6 + $0x54]] }
  0x34   :  { %s1204_s27 = sld [smem:[#allocation6 + $0xd]]  ;;  %v220_v2 = vadd.f32 %v174_v50, %v164_v46  ;;  %v1233_v4 = vsel %vm82_vm1, %v267_v42, %v265_v58  ;;  %v280_v6 = vstv %s1165_s22  ;;  %v1239_v7 = vsub.f32 %v169_v56, %v189_v57 }
  0x35   :  { %s1209_s28 = sld [smem:[#allocation6 + $0x31]]  ;;  %v210_v54 = vmax.f32 %v1189_v37, %v1191_v29  ;;  %v211_v55 = vmax.f32 %v1193_v38, %v209_v32  ;;  %v279_v5 = vstv %s1173_s23  ;;  %v1241_v8 = vadd.f32 %v189_v57, %v169_v56 }
  0x36   :  { %s1214_s29 = sld [smem:[#allocation6 + $0x55]]  ;;  %v273_v9 = vsel %vm81_vm0, %v271_v59, %v272_v61  ;;  %v275_v10 = vstv %s1163_s21  ;;  %v217_v15 = vsub.f32 %v194_v63, %v184_v62  ;;  %v222_v16 = vadd.f32 %v194_v63, %v184_v62  ;;  %v1349_v63 = vld [vmem:[#allocation2 + $0x48] sm:$0xff] }
  0x37   :  { %s1219_s30 = sld [smem:[#allocation6 + $0xe]]  ;;  %v1229_v3 = vmax.f32 %v210_v54, %v211_v55  ;;  %v281_v17 = vsel %vm81_vm0, %v279_v5, %v280_v6  ;;  %v283_v18 = vstv %s1181_s24  ;;  %v1260_v20 = vsel %vm82_vm1, %v275_v10, %v273_v9  ;;  %1980 = vst [vmem:[#allocation11_spill] sm:$0xff] %v1349_v63 }
  0x38   :  { %s1223_s3 = sld [smem:[#allocation6 + $0x32]]  ;;  %v288_v21 = vstv %s1187_s1  ;;  %v333_v22 = vmul.f32 %v1233_v4, %v1063_v11  ;;  %v287_v30 = vstv %s1195_s25  ;;  %v1286_v33 = vsel %vm82_vm1, %v283_v18, %v281_v17 }
  0x39   :  { %s1227_s4 = sld [smem:[#allocation6 + $0x56]]  ;;  %vm216_vm2 = vcmp.eq.f32.partialorder %v1193_v38, %v1229_v3  ;;  %v213_v19 = vmax.f32 %v1229_v3, 0.0  ;;  %vm215_vm3 = vcmp.eq.f32.partialorder %v1191_v29, %v1229_v3  ;;  %v1282_v31 = vmax.f32 %v1229_v3, 0.01 }
  0x3a   :  { %s1237_s5 = sld [smem:[#allocation6 + $0xf]]  ;;  %v223_v23 = vsel %vm216_vm2, %v1239_v7, %v1225_v1  ;;  %v226_v26 = vsel %vm216_vm2, %v220_v2, %v1241_v8  ;;  %v296_v13 = vstv %s1204_s27  ;;  %v334_v36 = vmul.f32 %v1260_v20, %v1065_v12 }
  0x3b   :  { %s1246_s6 = sld [smem:[#allocation6 + $0x33]]  ;;  %v295_v34 = vstv %s1209_s28  ;;  %v338_v32 = vmul.f32 %v1233_v4, %v1093_v27  ;;  %vm214_vm4 = vcmp.eq.f32.partialorder %v1189_v37, %v1229_v3  ;;  %v224_v39 = vsel %vm215_vm3, %v217_v15, %v223_v23 }
  0x3c   :  { %s1250_s7 = sld [smem:[#allocation6 + $0x10]]  ;;  %v227_v40 = vsel %vm215_vm3, %v213_v19, %v226_v26  ;;  %v289_v43 = vsel %vm81_vm0, %v287_v30, %v288_v21  ;;  %v229_v44 = vsel %vm216_vm2, %v213_v19, %v222_v16  ;;  %v291_v46 = vstv %s1200_s26 }
  0x3d   :  { %s1255_s8 = sld [smem:[#allocation6 + $0x34]]  ;;  %v304_v35 = vstv %s1219_s30  ;;  %v297_v47 = vsel %vm81_vm0, %v295_v34, %v296_v13  ;;  %v299_v48 = vstv %s1214_s29  ;;  %v232_v49 = vsel %vm216_vm2, %v222_v16, %v213_v19 }
  0x3e   :  { %s1263_s9 = sld [smem:[#allocation6 + $0x11]]  ;;  %v303_v14 = vstv %s1223_s3  ;;  %942 = vrcp.f32 %v1282_v31  ;;  %v225_v52 = vsel %vm214_vm4, %v213_v19, %v224_v39  ;;  %v228_v25 = vsel %vm214_vm4, %v217_v15, %v227_v40  ;;  %v1356_v15 = vld [vmem:[#allocation2 + $0x50] sm:$0xff] }
  0x3f   :  { %s1279_s10 = sld [smem:[#allocation6 + $0x35]]  ;;  %v305_v50 = vsel %vm81_vm0, %v303_v14, %v304_v35  ;;  %v307_v51 = vstv %s1227_s4  ;;  %v292_v38 = vsel %vm82_vm1, %v291_v46, %v289_v43  ;;  %v300_v56 = vsel %vm82_vm1, %v299_v48, %v297_v47  ;;  %1981 = vst [vmem:[#allocation12_spill] sm:$0xff] %v1356_v15 }
  0x40   :  { %s1290_s11 = sld [smem:[#allocation6 + $0x57]]  ;;  %v312_v55 = vstv %s1237_s5  ;;  %v230_v42 = vsel %vm215_vm3, %v220_v2, %v229_v44  ;;  %v1345_v59 = vsel %vm82_vm1, %v307_v51, %v305_v50  ;;  %v335_v9 = vadd.f32 %v334_v36, %v333_v22 }
  0x41   :  { %s1294_s12 = sld [smem:[#allocation6 + $0x58]]  ;;  %v311_v54 = vstv %s1246_s6  ;;  %v336_v10 = vmul.f32 %v1286_v33, %v1087_v24  ;;  %v353_v17 = vmul.f32 %v292_v38, %v1093_v27  ;;  %v354_v18 = vmul.f32 %v300_v56, %v1095_v28 }
  0x42   :  { %s1310_s13 = sld [smem:[#allocation6 + $0x59]]  ;;  %v320_v58 = vstv %s1250_s7  ;;  %v313_v5 = vsel %vm81_vm0, %v311_v54, %v312_v55  ;;  %v339_v22 = vmul.f32 %v1260_v20, %v1095_v28  ;;  %v356_v26 = vmul.f32 %v1345_v59, %v1115_v41 }
  0x43   :  { %v319_v57 = vstv %s1255_s8  ;;  %v231_v30 = vsel %vm214_vm4, %v1239_v7, %v230_v42  ;;  %v233_v34 = vsel %vm215_vm3, %v1241_v8, %v232_v49  ;;  %v235_v13 = vmul.f32 %v225_v52, %v1349_v63  ;;  %s1386_s14 = sld [smem:[#allocation6 + $0x12]] }
  0x44   :  { %v328_v62 = vstv %s1263_s9  ;;  %v321_v2 = vsel %vm81_vm0, %v319_v57, %v320_v58  ;;  %v1363_v19 = vpop.eup %942  ;;  %v355_v14 = vadd.f32 %v354_v18, %v353_v17  ;;  %v236_v35 = vmul.f32 %v228_v25, %v1356_v15  ;;  %s1398_s15 = sld [smem:[#allocation6 + $0x36]] }
  0x45   :  { %v327_v61 = vstv %s1279_s10  ;;  %v337_v40 = vadd.f32 %v336_v10, %v335_v9  ;;  %v1390_v7 = vmul.f32 %v1363_v19, %v1282_v31  ;;  %v343_v8 = vmul.f32 %v1233_v4, %v1122_v45  ;;  %s1404_s16 = sld [smem:[#allocation6 + $0x5a]] }
  0x46   :  { %v315_v6 = vstv %s1290_s11  ;;  %v329_v21 = vsel %vm81_vm0, %v327_v61, %v328_v62  ;;  %v344_v43 = vmul.f32 %v1260_v20, %v1130_v53  ;;  %v340_v44 = vadd.f32 %v339_v22, %v338_v32  ;;  %s1410_s17 = sld [smem:[#allocation6 + $0x13]] }
  0x47   :  { %v323_v16 = vstv %s1294_s12  ;;  %v316_v36 = vsel %vm82_vm1, %v315_v6, %v313_v5  ;;  %v341_v46 = vmul.f32 %v1286_v33, %v1115_v41  ;;  %v346_v47 = vmul.f32 %v1286_v33, %v1139_v60  ;;  %s1415_s18 = sld [smem:[#allocation6 + $0x37]]  ;;  %v1424_v5 = vld [vmem:[#allocation2 + $0x58] sm:$0xff] }
  0x48   :  { %v331_v23 = vstv %s1310_s13  ;;  %v324_v39 = vsel %vm82_vm1, %v323_v16, %v321_v2  ;;  %v357_v48 = vadd.f32 %v356_v26, %v355_v14  ;;  %v348_v49 = vmul.f32 %v292_v38, %v1063_v11  ;;  %s1418_s19 = sld [smem:[#allocation6 + $0x5b]] }
  0x49   :  { %v332_v29 = vsel %vm82_vm1, %v331_v23, %v329_v21  ;;  %v349_v50 = vmul.f32 %v300_v56, %v1065_v12  ;;  %v373_v4 = vmul.f32 %v316_v36, %v1122_v45  ;;  %v374_v20 = vmul.f32 %v324_v39, %v1130_v53  ;;  %s1422_s0 = sld [smem:[#allocation6 + $0x14]] }
  0x4a   :  { %v363_v32 = vmul.f32 %v316_v36, %v1063_v11  ;;  %v364_v51 = vmul.f32 %v324_v39, %v1065_v12  ;;  %v376_v52 = vmul.f32 %v332_v29, %v1139_v60  ;;  %v378_v33 = vadd.f32 1.0, %v337_v40  ;;  %s1427_s20 = sld [smem:[#allocation6 + $0x38]] }
  0x4b   :  { %v345_v25 = vadd.f32 %v344_v43, %v343_v8  ;;  %v358_v54 = vmul.f32 %v292_v38, %v1122_v45  ;;  %v375_v55 = vadd.f32 %v374_v20, %v373_v4  ;;  %v383_v57 = vsub.f32 1.0, %v337_v40  ;;  %s1432_s21 = sld [smem:[#allocation6 + $0x5c]]  ;;  %v1450_v40 = vld [vmem:[#allocation2 + $0x60] sm:$0xff] }
  0x4c   :  { %v359_v58 = vmul.f32 %v300_v56, %v1130_v53  ;;  %v368_v42 = vmul.f32 %v316_v36, %v1093_v27  ;;  %v379_v61 = vadd.f32 %v378_v33, %v357_v48  ;;  %v381_v62 = vsub.f32 %v378_v33, %v357_v48  ;;  %s1440_s22 = sld [smem:[#allocation6 + $0x15]] }
  0x4d   :  { %v369_v6 = vmul.f32 %v324_v39, %v1095_v28  ;;  %v377_v9 = vadd.f32 %v376_v52, %v375_v55  ;;  %v384_v10 = vadd.f32 %v383_v57, %v357_v48  ;;  %v386_v2 = vsub.f32 %v383_v57, %v357_v48  ;;  %s1448_s23 = sld [smem:[#allocation6 + $0x39]] }
  0x4e   :  { %v350_v38 = vadd.f32 %v349_v50, %v348_v49  ;;  %v351_v16 = vmul.f32 %v1345_v59, %v1087_v24  ;;  %v365_v56 = vadd.f32 %v364_v51, %v363_v32  ;;  %v366_v17 = vmul.f32 %v332_v29, %v1087_v24  ;;  %s1455_s24 = sld [smem:[#allocation6 + $0x5d]] }
  0x4f   :  { %v1434_v18 = vadd.f32 %v379_v61, %v377_v9  ;;  %v1436_v21 = vsub.f32 %v381_v62, %v377_v9  ;;  %v1438_v23 = vsub.f32 %v384_v10, %v377_v9  ;;  %v387_v22 = vadd.f32 %v386_v2, %v377_v9  ;;  %s1460_s1 = sld [smem:[#allocation6 + $0x16]] }
  0x50   :  { %v234_v26 = vsel %vm214_vm4, %v1225_v1, %v233_v34  ;;  %v237_v14 = vadd.f32 %v236_v35, %v235_v13  ;;  %v238_v36 = vmul.f32 %v231_v30, %v1424_v5  ;;  %v247_v39 = vsub.f32 1.0, %v1390_v7  ;;  %s1462_s25 = sld [smem:[#allocation6 + $0x3a]] }
  0x51   :  { %v360_v8 = vadd.f32 %v359_v58, %v358_v54  ;;  %v361_v43 = vmul.f32 %v1345_v59, %v1139_v60  ;;  %v370_v48 = vadd.f32 %v369_v6, %v368_v42  ;;  %v371_v49 = vmul.f32 %v332_v29, %v1115_v41  ;;  %s1467_s26 = sld [smem:[#allocation6 + $0x5e]] }
  0x52   :  { %v388_v37 = vmax.f32 %v1434_v18, %v1436_v21  ;;  %v389_v1 = vmax.f32 %v1438_v23, %v387_v22  ;;  %v342_v3 = vadd.f32 %v341_v46, %v340_v44  ;;  %v347_v30 = vadd.f32 %v346_v47, %v345_v25  ;;  %s1471_s27 = sld [smem:[#allocation6 + $0x17]] }
  0x53   :  { %v352_v34 = vadd.f32 %v351_v16, %v350_v38  ;;  %v367_v13 = vadd.f32 %v366_v17, %v365_v56  ;;  %v239_v59 = vadd.f32 %v238_v36, %v237_v14  ;;  %v240_v35 = vmul.f32 %v234_v26, %v1450_v40  ;;  %s1478_s28 = sld [smem:[#allocation6 + $0x3b]] }
  0x54   :  { %v248_v7 = vmul.f32 %v1363_v19, %v247_v39  ;;  %vm250_vm5 = vweird.f32 %v1282_v31  ;;  %v254_v29 = vand.u32 2147483647, %v1282_v31  ;;  %v256_v44 = vand.u32 2147483648, %v1282_v31  ;;  %s1486_s29 = sld [smem:[#allocation6 + $0x5f]] }
  0x55   :  { %v362_v46 = vadd.f32 %v361_v43, %v360_v8  ;;  %v372_v47 = vadd.f32 %v371_v49, %v370_v48  ;;  %vm251_vm6 = vweird.f32 %v1363_v19  ;;  %v1474_v50 = vmax.f32 %v388_v37, %v389_v1  ;;  %s1493_s30 = sld [smem:[#allocation6 + $0x18]] }
  0x56   :  { %v442_v4 = vstv %s1398_s15  ;;  %v443_v20 = vstv %s1386_s14  ;;  %v1480_v32 = vsub.f32 %v347_v30, %v367_v13  ;;  %v1482_v51 = vsub.f32 %v352_v34, %v342_v3  ;;  %vm1499_vm8 = vmor %vm250_vm5, %vm251_vm6  ;;  %s1506_s3 = sld [smem:[#allocation6 + $0x3c]] }
  0x57   :  { %v450_v52 = vstv %s1415_s18  ;;  %v451_v33 = vstv %s1410_s17  ;;  %v241_v25 = vadd.f32 %v240_v35, %v239_v59  ;;  %v1489_v54 = vadd.f32 %v1363_v19, %v248_v7  ;;  %s1513_s4 = sld [smem:[#allocation6 + $0x19]] }
  0x58   :  { %vm394_vm7 = vcmp.eq.f32.partialorder %v1438_v23, %v1474_v50  ;;  %v398_v55 = vadd.f32 %v352_v34, %v342_v3  ;;  %v395_v58 = vsub.f32 %v372_v47, %v362_v46  ;;  %v399_v42 = vadd.f32 %v367_v13, %v347_v30  ;;  %s1523_s5 = sld [smem:[#allocation6 + $0x3d]] }
  0x59   :  { %v444_v61 = vsel %vm81_vm0, %v442_v4, %v443_v20  ;;  %v446_v62 = vstv %s1404_s16  ;;  %v452_v6 = vsel %vm81_vm0, %v450_v52, %v451_v33  ;;  %v454_v9 = vstv %s1418_s19  ;;  %s1535_s6 = sld [smem:[#allocation6 + $0x1a]] }
  0x5a   :  { %v458_v10 = vstv %s1427_s20  ;;  %v459_v2 = vstv %s1422_s0  ;;  %v391_v38 = vmax.f32 %v1474_v50, 0.0  ;;  %vm393_vm9 = vcmp.eq.f32.partialorder %v1436_v21, %v1474_v50  ;;  %s1543_s7 = sld [smem:[#allocation6 + $0x3e]] }
  0x5b   :  { %v400_v16 = vadd.f32 %v372_v47, %v362_v46  ;;  %v401_v56 = vsel %vm394_vm7, %v1480_v32, %v1482_v51  ;;  %v1525_v17 = vmul.f32 %v241_v25, %v241_v25  ;;  %v253_v22 = vsel %vm1499_vm8, %v1363_v19, %v1489_v54  ;;  %s1554_s8 = sld [smem:[#allocation6 + $0x60]] }
  0x5c   :  { %v1531_v26 = vor.u32 1.1754944e-38, %v256_v44  ;;  %v447_v14 = vsel %vm82_vm1, %v446_v62, %v444_v61  ;;  %v455_v36 = vsel %vm82_vm1, %v454_v9, %v452_v6  ;;  %v460_v39 = vsel %vm81_vm0, %v458_v10, %v459_v2  ;;  %s1564_s9 = sld [smem:[#allocation6 + $0x61]] }
  0x5d   :  { %v462_v8 = vstv %s1432_s21  ;;  %v466_v43 = vstv %s1448_s23  ;;  %vm392_vm10 = vcmp.eq.f32.partialorder %v1434_v18, %v1474_v50  ;;  %v402_v48 = vsel %vm393_vm9, %v395_v58, %v401_v56  ;;  %s1571_s10 = sld [smem:[#allocation6 + $0x62]] }
  0x5e   :  { %v404_v49 = vsel %vm394_vm7, %v398_v55, %v399_v42  ;;  %v467_v37 = vstv %s1440_s22  ;;  %v407_v1 = vsel %vm394_vm7, %v391_v38, %v400_v16  ;;  %v410_v3 = vsel %vm394_vm7, %v400_v16, %v391_v38  ;;  %s1646_s11 = sld [smem:[#allocation6 + $0x1b]] }
  0x5f   :  { %v474_v30 = vstv %s1462_s25  ;;  %v475_v34 = vstv %s1460_s1  ;;  %v463_v13 = vsel %vm82_vm1, %v462_v8, %v460_v39  ;;  %v470_v59 = vstv %s1455_s24  ;;  %s1652_s12 = sld [smem:[#allocation6 + $0x3f]] }
  0x60   :  { %v482_v35 = vstv %s1478_s28  ;;  %v483_v7 = vstv %s1471_s27  ;;  %v403_v23 = vsel %vm392_vm10, %v391_v38, %v402_v48  ;;  %v405_v44 = vsel %vm393_vm9, %v391_v38, %v404_v49  ;;  %s1659_s13 = sld [smem:[#allocation6 + $0x63]] }
  0x61   :  { %v1580_v46 = vmax.f32 %v1474_v50, 0.01  ;;  %v468_v47 = vsel %vm81_vm0, %v466_v43, %v467_v37  ;;  %v408_v4 = vsel %vm393_vm9, %v398_v55, %v407_v1  ;;  %v411_v20 = vsel %vm393_vm9, %v399_v42, %v410_v3  ;;  %s1664_s14 = sld [smem:[#allocation6 + $0x1c]] }
  0x62   :  { %v476_v52 = vsel %vm81_vm0, %v474_v30, %v475_v34  ;;  %v478_v33 = vstv %s1467_s26  ;;  %v484_v25 = vsel %vm81_vm0, %v482_v35, %v483_v7  ;;  %v486_v61 = vstv %s1486_s29  ;;  %s1674_s15 = sld [smem:[#allocation6 + $0x40]] }
  0x63   :  { %v490_v62 = vstv %s1506_s3  ;;  %v491_v6 = vstv %s1493_s30  ;;  %v498_v9 = vstv %s1523_s5  ;;  %v499_v10 = vstv %s1513_s4  ;;  %s1680_s16 = sld [smem:[#allocation6 + $0x64]] }
  0x64   :  { %v512_v55 = vmul.f32 %v447_v14, %v1063_v11  ;;  %v513_v21 = vmul.f32 %v455_v36, %v1065_v12  ;;  %v406_v42 = vsel %vm392_vm10, %v395_v58, %v405_v44  ;;  %v1609_v2 = vsel %vm392_vm10, %v1480_v32, %v408_v4  ;;  %s1687_s17 = sld [smem:[#allocation6 + $0x1d]] }
  0x65   :  { %v506_v38 = vstv %s1543_s7  ;;  %v507_v16 = vstv %s1535_s6  ;;  %v1617_v56 = vsel %vm392_vm10, %v1482_v51, %v411_v20  ;;  %v471_v39 = vsel %vm82_vm1, %v470_v59, %v468_v47  ;;  %s1691_s18 = sld [smem:[#allocation6 + $0x41]] }
  0x66   :  { %v479_v58 = vsel %vm82_vm1, %v478_v33, %v476_v52  ;;  %v494_v8 = vstv %s1554_s8  ;;  %v1626_v43 = vsel %vm82_vm1, %v486_v61, %v484_v25  ;;  %v492_v32 = vsel %vm81_vm0, %v490_v62, %v491_v6  ;;  %s1694_s19 = sld [smem:[#allocation6 + $0x65]]  ;;  %s1029_s8 = smov [#allocation7]  }
  0x67   :  { %v500_v48 = vsel %vm81_vm0, %v498_v9, %v499_v10  ;;  %v502_v18 = vstv %s1564_s9  ;;  %v508_v50 = vsel %vm81_vm0, %v506_v38, %v507_v16  ;;  %v510_v51 = vstv %s1571_s10  ;;  %s1698_s0 = sld [smem:[#allocation6 + $0x1e]]  ;;  %s804_s9 = sshll.u32 %s1029_s8, 4  ;;  %s805_s9 = int_to_ptr.vmem [resolvable:$true] %s804_s9 }
  0x68   :  { %v514_v49 = vadd.f32 %v513_v21, %v512_v55  ;;  %v515_v37 = vmul.f32 %v463_v13, %v1087_v24  ;;  %v517_v1 = vmul.f32 %v447_v14, %v1093_v27  ;;  %v518_v3 = vmul.f32 %v455_v36, %v1095_v28  ;;  %s1703_s20 = sld [smem:[#allocation6 + $0x42]] }
  0x69   :  { %v532_v30 = vmul.f32 %v471_v39, %v1093_v27  ;;  %v533_v34 = vmul.f32 %v479_v58, %v1095_v28  ;;  %944 = vrcp.f32 %v1580_v46  ;;  %v522_v59 = vmul.f32 %v447_v14, %v1122_v45  ;;  %s1711_s21 = sld [smem:[#allocation6 + $0x66]] }
  0x6a   :  { %v523_v35 = vmul.f32 %v455_v36, %v1130_v53  ;;  %v535_v7 = vmul.f32 %v1626_v43, %v1115_v41  ;;  %v413_v44 = vmul.f32 %v403_v23, %v1349_v63  ;;  %v414_v47 = vmul.f32 %v406_v42, %v1356_v15  ;;  %s1713_s22 = sld [smem:[#allocation6 + $0x1f]] }
  0x6b   :  { %v495_v4 = vsel %vm82_vm1, %v494_v8, %v492_v32  ;;  %v534_v20 = vadd.f32 %v533_v34, %v532_v30  ;;  %v503_v14 = vsel %vm82_vm1, %v502_v18, %v500_v48  ;;  %v511_v36 = vsel %vm82_vm1, %v510_v51, %v508_v50  ;;  %s1720_s23 = sld [smem:[#allocation6 + $0x43]] }
  0x6c   :  { %v516_v52 = vadd.f32 %v515_v37, %v514_v49  ;;  %v520_v33 = vmul.f32 %v463_v13, %v1115_v41  ;;  %v519_v23 = vadd.f32 %v518_v3, %v517_v1  ;;  %v525_v25 = vmul.f32 %v463_v13, %v1139_v60  ;;  %s1722_s24 = sld [smem:[#allocation6 + $0x67]] }
  0x6d   :  { %v527_v61 = vmul.f32 %v471_v39, %v1063_v11  ;;  %v528_v62 = vmul.f32 %v479_v58, %v1065_v12  ;;  %vm1668_vm11 = vcmp.eq.f32.partialorder %v254_v29, 8.507059e+37  ;;  %v524_v9 = vadd.f32 %v523_v35, %v522_v59  ;;  %s1741_s1 = sld [smem:[#allocation6 + $0x20]] }
  0x6e   :  { %v536_v10 = vadd.f32 %v535_v7, %v534_v20  ;;  %v542_v55 = vmul.f32 %v495_v4, %v1063_v11  ;;  %v543_v21 = vmul.f32 %v503_v14, %v1065_v12  ;;  %v537_v13 = vmul.f32 %v471_v39, %v1122_v45  ;;  %s1747_s25 = sld [smem:[#allocation6 + $0x44]] }
  0x6f   :  { %v538_v42 = vmul.f32 %v479_v58, %v1130_v53  ;;  %v552_v38 = vmul.f32 %v495_v4, %v1122_v45  ;;  %v553_v31 = vmul.f32 %v503_v14, %v1130_v53  ;;  %v1682_v29 = vpop.eup %944  ;;  %v547_v16 = vmul.f32 %v495_v4, %v1093_v27  ;;  %s1753_s26 = sld [smem:[#allocation6 + $0x68]] }
  0x70   :  { %v548_v11 = vmul.f32 %v503_v14, %v1095_v28  ;;  %v555_v12 = vmul.f32 %v511_v36, %v1139_v60  ;;  %v557_v8 = vadd.f32 1.0, %v516_v52  ;;  %v529_v39 = vadd.f32 %v528_v62, %v527_v61  ;;  %s1758_s27 = sld [smem:[#allocation6 + $0x21]] }
  0x71   :  { %v530_v58 = vmul.f32 %v1626_v43, %v1087_v24  ;;  %v554_v45 = vadd.f32 %v553_v31, %v552_v38  ;;  %v562_v32 = vsub.f32 1.0, %v516_v52  ;;  %v544_v53 = vadd.f32 %v543_v21, %v542_v55  ;;  %s1763_s28 = sld [smem:[#allocation6 + $0x45]] }
  0x72   :  { %v545_v48 = vmul.f32 %v511_v36, %v1087_v24  ;;  %v558_v18 = vadd.f32 %v557_v8, %v536_v10  ;;  %v560_v27 = vsub.f32 %v557_v8, %v536_v10  ;;  %v424_v28 = vmul.f32 %v1682_v29, %v1580_v46  ;;  %s1777_s29 = sld [smem:[#allocation6 + $0x69]] }
  0x73   :  { %v556_v50 = vadd.f32 %v555_v12, %v554_v45  ;;  %v563_v51 = vadd.f32 %v562_v32, %v536_v10  ;;  %v565_v49 = vsub.f32 %v562_v32, %v536_v10  ;;  %v539_v37 = vadd.f32 %v538_v42, %v537_v13  ;;  %s1786_s30 = sld [smem:[#allocation6 + $0x22]] }
  0x74   :  { %v540_v1 = vmul.f32 %v1626_v43, %v1139_v60  ;;  %v549_v3 = vadd.f32 %v548_v11, %v547_v16  ;;  %v550_v30 = vmul.f32 %v511_v36, %v1115_v41  ;;  %v521_v7 = vadd.f32 %v520_v33, %v519_v23  ;;  %s1793_s3 = sld [smem:[#allocation6 + $0x46]] }
  0x75   :  { %v1705_v24 = vadd.f32 %v558_v18, %v556_v50  ;;  %v1707_v34 = vsub.f32 %v560_v27, %v556_v50  ;;  %v1709_v59 = vsub.f32 %v563_v51, %v556_v50  ;;  %v566_v35 = vadd.f32 %v565_v49, %v556_v50  ;;  %s1806_s4 = sld [smem:[#allocation6 + $0x23]] }
  0x76   :  { %v526_v4 = vadd.f32 %v525_v25, %v524_v9  ;;  %v531_v20 = vadd.f32 %v530_v58, %v529_v39  ;;  %v546_v14 = vadd.f32 %v545_v48, %v544_v53  ;;  %v415_v60 = vadd.f32 %v414_v47, %v413_v44  ;;  %s1817_s5 = sld [smem:[#allocation6 + $0x47]] }
  0x77   :  { %v416_v41 = vmul.f32 %v1609_v2, %v1424_v5  ;;  %v567_v43 = vmax.f32 %v1705_v24, %v1707_v34  ;;  %v568_v36 = vmax.f32 %v1709_v59, %v566_v35  ;;  %v425_v52 = vsub.f32 1.0, %v424_v28  ;;  %s1826_s6 = sld [smem:[#allocation6 + $0x6a]] }
  0x78   :  { %v541_v61 = vadd.f32 %v540_v1, %v539_v37  ;;  %v551_v33 = vadd.f32 %v550_v30, %v549_v3  ;;  %v1725_v23 = vmul.f32 0.25, %v1525_v17  ;;  %v1735_v2 = vsel %vm1668_vm11, %v1531_v26, %v253_v22  ;;  %s1840_s7 = sld [smem:[#allocation6 + $0x6b]] }
  0x79   :  { %1987 = vst [vmem:[#allocation14_spill] sm:$0xff] %v1735_v2  ;;  %v418_v44 = vmul.f32 %v1617_v56, %v1450_v40  ;;  %v1739_v47 = vmax.f32 %v567_v43, %v568_v36  ;;  %v1743_v17 = vsub.f32 %v526_v4, %v546_v14  ;;  %v1745_v57 = vsub.f32 %v531_v20, %v521_v7 }
  0x7a   :  { %1986 = vst [vmem:[#allocation13_spill] sm:$0xff] %v1725_v23  ;;  %v577_v19 = vadd.f32 %v531_v20, %v521_v7  ;;  %v578_v54 = vadd.f32 %v546_v14, %v526_v4  ;;  %v417_v22 = vadd.f32 %v416_v41, %v415_v60  ;;  %v621_v26 = vstv %s1652_s12  ;;  %s806_s12 = sshll.u32 %s1977_s2, 4  ;;  %s807_s12 = int_to_ptr.hbm [resolvable:$true] %s806_s12 }
  0x7b   :  { %vm573_vm12 = vcmp.eq.f32.partialorder %v1709_v59, %v1739_v47  ;;  %v622_v56 = vstv %s1646_s11  ;;  %v426_v25 = vmul.f32 %v1682_v29, %v425_v52  ;;  %v574_v62 = vsub.f32 %v551_v33, %v541_v61 }
  0x7c   :  { %v629_v6 = vstv %s1674_s15  ;;  %v630_v9 = vstv %s1664_s14  ;;  %v570_v10 = vmax.f32 %v1739_v47, 0.0  ;;  %v579_v55 = vadd.f32 %v551_v33, %v541_v61 }
  0x7d   :  { %v637_v21 = vstv %s1691_s18  ;;  %v638_v13 = vstv %s1687_s17  ;;  %vm572_vm13 = vcmp.eq.f32.partialorder %v1707_v34, %v1739_v47  ;;  %v580_v42 = vsel %vm573_vm12, %v1743_v17, %v1745_v57 }
  0x7e   :  { %v583_v38 = vsel %vm573_vm12, %v577_v19, %v578_v54  ;;  %v623_v31 = vsel %vm81_vm0, %v621_v26, %v622_v56  ;;  %v1780_v16 = vmax.f32 %v1739_v47, 0.01  ;;  %v625_v11 = vstv %s1659_s13 }
  0x7f   :  { %v631_v12 = vsel %vm81_vm0, %v629_v6, %v630_v9  ;;  %v633_v8 = vstv %s1680_s16  ;;  %v639_v45 = vsel %vm81_vm0, %v637_v21, %v638_v13  ;;  %v641_v32 = vstv %s1694_s19  ;;  %v951_v21 = vld [vmem:[#allocation2 + $0x18] sm:$0xff] }
  0x80   :  { %vm571_vm14 = vcmp.eq.f32.partialorder %v1705_v24, %v1739_v47  ;;  %v581_v53 = vsel %vm572_vm13, %v574_v62, %v580_v42  ;;  %v584_v48 = vsel %vm572_vm13, %v570_v10, %v583_v38  ;;  %v586_v18 = vsel %vm573_vm12, %v570_v10, %v579_v55 }
  0x81   :  { %v1808_v27 = vadd.f32 %v418_v44, %v417_v22  ;;  %v1811_v28 = vadd.f32 %v1682_v29, %v426_v25  ;;  %v626_v50 = vsel %vm82_vm1, %v625_v11, %v623_v31  ;;  %v634_v51 = vsel %vm82_vm1, %v633_v8, %v631_v12 }
  0x82   :  { %946 = vrcp.f32 %v1780_v16  ;;  %v1822_v49 = vsel %vm82_vm1, %v641_v32, %v639_v45  ;;  %v645_v37 = vstv %s1703_s20  ;;  %v646_v1 = vstv %s1698_s0 }
  0x83   :  { %v582_v3 = vsel %vm571_vm14, %v570_v10, %v581_v53  ;;  %v585_v30 = vsel %vm571_vm14, %v574_v62, %v584_v48  ;;  %v587_v35 = vsel %vm572_vm13, %v577_v19, %v586_v18  ;;  %v589_v7 = vsel %vm573_vm12, %v579_v55, %v570_v10  ;;  %v950_v10 = vld [vmem:[#allocation2] sm:$0xff]  ;;  %v952_v48 = vld [vmem:[#allocation2 + $0x30] sm:$0xff] }
  0x84   :  { %v653_v4 = vstv %s1720_s23  ;;  %v654_v20 = vstv %s1713_s22  ;;  %v661_v14 = vstv %s1747_s25  ;;  %v662_v60 = vstv %s1741_s1 }
  0x85   :  { %v647_v41 = vsel %vm81_vm0, %v645_v37, %v646_v1  ;;  %v649_v43 = vstv %s1711_s21  ;;  %v669_v36 = vstv %s1763_s28  ;;  %v670_v59 = vstv %s1758_s27  ;;  %v953_v37 = vld [vmem:[#allocation2 + $0x8] sm:$0xff] }
  0x86   :  { %v1855_v52 = vsel %vm571_vm14, %v1743_v17, %v587_v35  ;;  %v1860_v61 = vsel %vm572_vm13, %v578_v54, %v589_v7  ;;  %v1863_v33 = vmul.f32 %v582_v3, %v1349_v63  ;;  %v1866_v44 = vmul.f32 %v585_v30, %v1356_v15  ;;  %v954_v3 = vld [vmem:[#allocation2 + $0x20] sm:$0xff]  ;;  %v955_v7 = vld [vmem:[#allocation2 + $0x10] sm:$0xff] }
  0x87   :  { %v655_v19 = vsel %vm81_vm0, %v653_v4, %v654_v20  ;;  %v657_v22 = vstv %s1722_s24  ;;  %v663_v26 = vsel %vm81_vm0, %v661_v14, %v662_v60  ;;  %v665_v17 = vstv %s1753_s26  ;;  %v956_v20 = vld [vmem:[#allocation2 + $0x28] sm:$0xff] }
  0x88   :  { %v1874_v56 = vpop.eup %946  ;;  %v671_v34 = vsel %vm81_vm0, %v669_v36, %v670_v59  ;;  %v673_v54 = vstv %s1777_s29  ;;  %v677_v25 = vstv %s1793_s3  ;;  %v678_v62 = vstv %s1786_s30 }
  0x89   :  { %v685_v6 = vstv %s1817_s5  ;;  %v686_v9 = vstv %s1806_s4  ;;  %v691_v55 = vmul.f32 %v950_v10, %v626_v50  ;;  %v692_v13 = vmul.f32 %v951_v21, %v634_v51 }
  0x8a   :  { %v650_v42 = vsel %vm82_vm1, %v649_v43, %v647_v41  ;;  %v658_v38 = vsel %vm82_vm1, %v657_v22, %v655_v19  ;;  %v666_v31 = vsel %vm82_vm1, %v665_v17, %v663_v26  ;;  %v681_v11 = vstv %s1826_s6  ;;  %v957_v22 = vld [vmem:[#allocation2 + $0x38] sm:$0xff] }
  0x8b   :  { %v1892_v12 = vmul.f32 %v1874_v56, %v1780_v16  ;;  %v674_v8 = vsel %vm82_vm1, %v673_v54, %v671_v34  ;;  %v679_v45 = vsel %vm81_vm0, %v677_v25, %v678_v62  ;;  %v689_v32 = vstv %s1840_s7 }
  0x8c   :  { %v687_v53 = vsel %vm81_vm0, %v685_v6, %v686_v9  ;;  %v694_v18 = vmul.f32 %v952_v48, %v1822_v49  ;;  %v696_v1 = vmul.f32 %v953_v37, %v626_v50  ;;  %v697_v30 = vmul.f32 %v954_v3, %v634_v51 }
  0x8d   :  { %v693_v35 = vadd.f32 %v692_v13, %v691_v55  ;;  %v701_v4 = vmul.f32 %v955_v7, %v626_v50  ;;  %v702_v14 = vmul.f32 %v956_v20, %v634_v51  ;;  %v711_v60 = vmul.f32 %v953_v37, %v650_v42  ;;  %v958_v50 = vld [vmem:[#allocation2 + $0x40] sm:$0xff] }
  0x8e   :  { %vm428_vm15 = vweird.f32 %v1580_v46  ;;  %vm429_vm2 = vweird.f32 %v1682_v29  ;;  %v682_v41 = vsel %vm82_vm1, %v681_v11, %v679_v45  ;;  %v706_v43 = vmul.f32 %v950_v10, %v650_v42 }
  0x8f   :  { %v707_v36 = vmul.f32 %v951_v21, %v658_v38  ;;  %v712_v59 = vmul.f32 %v954_v3, %v658_v38  ;;  %v690_v19 = vsel %vm82_vm1, %v689_v32, %v687_v53  ;;  %v699_v26 = vmul.f32 %v957_v22, %v1822_v49  ;;  %vm1924_vm0 = vmor %vm428_vm15, %vm429_vm2 }
  0x90   :  { %v704_v51 = vmul.f32 %v958_v50, %v1822_v49  ;;  %v714_v17 = vmul.f32 %v957_v22, %v666_v31  ;;  %v698_v34 = vadd.f32 %v697_v30, %v696_v1  ;;  %v716_v25 = vmul.f32 %v955_v7, %v650_v42 }
  0x91   :  { %v713_v54 = vadd.f32 %v712_v59, %v711_v60  ;;  %v717_v62 = vmul.f32 %v956_v20, %v658_v38  ;;  %v695_v6 = vadd.f32 %v694_v18, %v693_v35  ;;  %v703_v9 = vadd.f32 %v702_v14, %v701_v4 }
  0x92   :  { %v721_v55 = vmul.f32 %v950_v10, %v674_v8  ;;  %v722_v13 = vmul.f32 %v951_v21, %v682_v41  ;;  %v708_v11 = vadd.f32 %v707_v36, %v706_v43  ;;  %v709_v45 = vmul.f32 %v952_v48, %v666_v31 }
  0x93   :  { %v719_v58 = vmul.f32 %v958_v50, %v666_v31  ;;  %v726_v0 = vmul.f32 %v953_v37, %v674_v8  ;;  %v715_v32 = vadd.f32 %v714_v17, %v713_v54  ;;  %v724_v53 = vmul.f32 %v952_v48, %v690_v19 }
  0x94   :  { %v727_v39 = vmul.f32 %v954_v3, %v682_v41  ;;  %v731_v2 = vmul.f32 %v955_v7, %v674_v8  ;;  %v718_v23 = vadd.f32 %v717_v62, %v716_v25  ;;  %v723_v15 = vadd.f32 %v722_v13, %v721_v55 }
  0x95   :  { %v732_v49 = vmul.f32 %v956_v20, %v682_v41  ;;  %v734_v63 = vmul.f32 %v958_v50, %v690_v19  ;;  %v729_v30 = vmul.f32 %v957_v22, %v690_v19  ;;  %v736_v42 = vadd.f32 1.0, %v695_v6 }
  0x96   :  { %v728_v1 = vadd.f32 %v727_v39, %v726_v0  ;;  %v741_v38 = vsub.f32 1.0, %v695_v6  ;;  %v591_v10 = vsel %vm571_vm14, %v1745_v57, %v1860_v61  ;;  %v594_v21 = vadd.f32 %v1866_v44, %v1863_v33 }
  0x97   :  { %v595_v31 = vmul.f32 %v1855_v52, %v1424_v5  ;;  %v733_v8 = vadd.f32 %v732_v49, %v731_v2  ;;  %v604_v48 = vsub.f32 1.0, %v1892_v12  ;;  %v737_v18 = vadd.f32 %v736_v42, %v715_v32 }
  0x98   :  { %v739_v39 = vsub.f32 %v736_v42, %v715_v32  ;;  %v742_v37 = vadd.f32 %v741_v38, %v715_v32  ;;  %v700_v3 = vadd.f32 %v699_v26, %v698_v34  ;;  %v705_v35 = vadd.f32 %v704_v51, %v703_v9  ;;  %v1996_v42 = vld [vmem:[#allocation11_spill] sm:$0xff] }
  0x99   :  { %v735_v7 = vadd.f32 %v734_v63, %v733_v8  ;;  %v744_v4 = vsub.f32 %v741_v38, %v715_v32  ;;  %v710_v47 = vadd.f32 %v709_v45, %v708_v11  ;;  %v720_v57 = vadd.f32 %v719_v58, %v718_v23 }
  0x9a   :  { %v725_v2 = vadd.f32 %v724_v53, %v723_v15  ;;  %v730_v52 = vadd.f32 %v729_v30, %v728_v1  ;;  %v420_v63 = vmul.f32 %v1808_v27, %v1808_v27  ;;  %v1990_v20 = vand.u32 2147483647, %v1580_v46 }
  0x9b   :  { %v738_v61 = vadd.f32 %v737_v18, %v735_v7  ;;  %v740_v33 = vsub.f32 %v739_v39, %v735_v7  ;;  %v743_v44 = vsub.f32 %v742_v37, %v735_v7  ;;  %v745_v12 = vadd.f32 %v744_v4, %v735_v7  ;;  %v1999_v7 = vld [vmem:[#allocation14_spill] sm:$0xff] }
  0x9c   :  { %vm1932_vm1 = vcmp.eq.f32.partialorder %v1990_v20, 8.507059e+37  ;;  %v1993_v60 = vand.u32 2147483648, %v1580_v46  ;;  %v596_v43 = vadd.f32 %v595_v31, %v594_v21  ;;  %v597_v15 = vmul.f32 %v591_v10, %v1450_v40  ;;  %v1997_v10 = vld [vmem:[#allocation12_spill] sm:$0xff] }
  0x9d   :  { %v431_v23 = vsel %vm1924_vm0, %v1682_v29, %v1811_v28  ;;  %v605_v58 = vmul.f32 %v1874_v56, %v604_v48  ;;  %v746_v27 = vmax.f32 %v738_v61, %v740_v33  ;;  %v747_v36 = vmax.f32 %v743_v44, %v745_v12 }
  0x9e   :  { %v435_v41 = vor.u32 1.1754944e-38, %v1993_v60  ;;  %v754_v59 = vsub.f32 %v705_v35, %v725_v2  ;;  %v755_v19 = vsub.f32 %v710_v47, %v700_v3  ;;  %v756_v22 = vadd.f32 %v710_v47, %v700_v3 }
  0x9f   :  { %v757_v26 = vadd.f32 %v725_v2, %v705_v35  ;;  %vm607_vm3 = vweird.f32 %v1780_v16  ;;  %v748_v46 = vmax.f32 %v746_v27, %v747_v36  ;;  %v753_v50 = vsub.f32 %v730_v52, %v720_v57  ;;  %v1998_v35 = vld [vmem:[#allocation13_spill] sm:$0xff] }
  0xa0   :  { %v758_v51 = vadd.f32 %v730_v52, %v720_v57  ;;  %v598_v17 = vadd.f32 %v597_v15, %v596_v43  ;;  %vm608_vm4 = vweird.f32 %v1874_v56  ;;  %v611_v34 = vand.u32 2147483647, %v1780_v16 }
  0xa1   :  { %v613_v29 = vand.u32 2147483648, %v1780_v16  ;;  %v749_v28 = vmax.f32 %v748_v46, 0.0  ;;  %vm750_vm5 = vcmp.eq.f32.partialorder %v738_v61, %v748_v46  ;;  %vm751_vm6 = vcmp.eq.f32.partialorder %v740_v33, %v748_v46  ;;  %vm1955_vm8 = vmor %vm607_vm3, %vm608_vm4 }
  0xa2   :  { %vm752_vm7 = vcmp.eq.f32.partialorder %v743_v44, %v748_v46  ;;  %v606_v54 = vadd.f32 %v1874_v56, %v605_v58  ;;  %v780_v6 = vmax.f32 %v748_v46, 0.01  ;;  %v421_v31 = vmul.f32 0.25, %v420_v63 }
  0xa3   :  { %v759_v25 = vsel %vm752_vm7, %v754_v59, %v755_v19  ;;  %v762_v62 = vsel %vm752_vm7, %v756_v22, %v757_v26  ;;  %v765_v13 = vsel %vm752_vm7, %v749_v28, %v758_v51  ;;  %v768_v11 = vsel %vm752_vm7, %v758_v51, %v749_v28 }
  0xa4   :  { %v760_v9 = vsel %vm751_vm6, %v753_v50, %v759_v25  ;;  %v763_v55 = vsel %vm751_vm6, %v749_v28, %v762_v62  ;;  %v766_v32 = vsel %vm751_vm6, %v756_v22, %v765_v13  ;;  %v769_v53 = vsel %vm751_vm6, %v757_v26, %v768_v11 }
  0xa5   :  { %v761_v45 = vsel %vm750_vm5, %v749_v28, %v760_v9  ;;  %v764_v0 = vsel %vm750_vm5, %v753_v50, %v763_v55  ;;  %v767_v1 = vsel %vm750_vm5, %v754_v59, %v766_v32  ;;  %v770_v30 = vsel %vm750_vm5, %v755_v19, %v769_v53 }
  0xa6   :  { %v771_v38 = vmul.f32 %v761_v45, %v1996_v42  ;;  %v772_v21 = vmul.f32 %v764_v0, %v1997_v10  ;;  %v599_v8 = vmul.f32 %v598_v17, %v598_v17  ;;  %v774_v48 = vmul.f32 %v767_v1, %v1424_v5 }
  0xa7   :  { %948 = vrcp.f32 %v780_v6  ;;  %v436_v16 = vsel %vm1932_vm1, %v435_v41, %v431_v23  ;;  %v614_v18 = vor.u32 1.1754944e-38, %v613_v29  ;;  %v776_v37 = vmul.f32 %v770_v30, %v1450_v40 }
  0xa8   :  { %v773_v39 = vadd.f32 %v772_v21, %v771_v38  ;;  %v610_v3 = vsel %vm1955_vm8, %v1874_v56, %v606_v54  ;;  %vm612_vm9 = vcmp.eq.f32.partialorder %v611_v34, 8.507059e+37  ;;  %v259_v4 = vmul.f32 %v1999_v7, %v1998_v35 }
  0xa9   :  { %v437_v47 = vmul.f32 %v436_v16, %v421_v31  ;;  %v600_v57 = vmul.f32 0.25, %v599_v8  ;;  %v615_v5 = vsel %vm612_vm9, %v614_v18, %v610_v3  ;;  %vm786_vm10 = vweird.f32 %v780_v6 }
  0xaa   :  { %v775_v24 = vadd.f32 %v774_v48, %v773_v39  ;;  %v260_v61 = vsub.f32 1.0, %v259_v4  ;;  %v792_v40 = vand.u32 2147483648, %v780_v6  ;;  %v790_v56 = vand.u32 2147483647, %v780_v6 }
  0xab   :  { %v438_v44 = vsub.f32 1.0, %v437_v47  ;;  %v616_v12 = vmul.f32 %v615_v5, %v600_v57 }
  0xac   :  { %v777_v2 = vadd.f32 %v776_v37, %v775_v24  ;;  %v793_v41 = vor.u32 1.1754944e-38, %v792_v40  ;;  %vm791_vm13 = vcmp.eq.f32.partialorder %v790_v56, 8.507059e+37 }
  0xad   :  { %v949_v52 = vpop.eup %948  ;;  %v439_v60 = vmin.f32 %v260_v61, %v438_v44  ;;  %v617_v43 = vsub.f32 1.0, %v616_v12 }
  0xae   :  { %v782_v33 = vmul.f32 %v949_v52, %v780_v6  ;;  %v778_v63 = vmul.f32 %v777_v2, %v777_v2  ;;  %vm787_vm11 = vweird.f32 %v949_v52 }
  0xaf   :  { %vm788_vm12 = vmor %vm786_vm10, %vm787_vm11  ;;  %v618_v36 = vmin.f32 %v439_v60, %v617_v43 }
  0xb0   :  { %v783_v20 = vsub.f32 1.0, %v782_v33  ;;  %v779_v15 = vmul.f32 0.25, %v778_v63 }
  0xb2   :  { %v784_v14 = vmul.f32 %v949_v52, %v783_v20 }
  0xb4   :  { %v785_v23 = vadd.f32 %v949_v52, %v784_v14 }
  0xb6   :  { %v789_v58 = vsel %vm788_vm12, %v949_v52, %v785_v23 }
  0xb7   :  { %v794_v27 = vsel %vm791_vm13, %v793_v41, %v789_v58 }
  0xb8   :  { %v795_v59 = vmul.f32 %v794_v27, %v779_v15 }
  0xba   :  { %v796_v19 = vsub.f32 1.0, %v795_v59 }
  0xbc   :  { %v797_v22 = vmin.f32 %v618_v36, %v796_v19 }
  0xbe   :  { %798 = vst [vmem:[#allocation7] sm:$0xff] %v797_v22 }
  0xbf   :  { %809 = dma.vmem_to_hbm [thread:$0]  %s805_s9, 128, %s807_s12, [#allocation4]  }
  0xc0   :  { %1023 = dma.done.wait [#allocation4], 128  }
  0xc1   :  { %1024 = vsyncadd [#allocation4], 4294967168 }
  0xc2   :  { %814 = vsyncpa [#allocation3], 1 }
  0xc3   :  { %815 = vsyncpa [#allocation4], 1 }
  0xc4   :  { %816 = vsyncpa [#allocation5], 1 }

</bundles_post_ra>
